<compile_context>
chip_gen: v7x
topology: tpu7x:2x2x1
jax: 0.10.0
libtpu: 0.0.40
codegen_flags: <defaults>
</compile_context>

<pallas_src>
import jax
import jax.numpy as jnp
from jax.experimental import pallas as pl
from jax.experimental.pallas import tpu as pltpu

# ---------------- sizes (small, deterministic) ----------------
B = 2         # batch
S = 8         # question sequence length
VOCAB = 50    # vocab size
E = 32        # word embedding dim
H = 32        # num_hid (GRU hidden / question feature dim)
V = 32        # visual feature dim (maml_v_emb output)
HA = 32       # attention joint dim
G = 2         # glimpse (args.gamma)
IMG = 16 * 16 # flattened maml image


# ---------------- single fused kernel ----------------
def ban_fused_kernel(
    x_ref,        # [B, IMG]        flattened image
    wemb_ref,     # [S*B, E]        word embeddings, time-major flat (row = s*B + b)
    wm_ref, bm_ref,                       # maml linear
    wih_ref, bih_ref, whh_ref, bhh_ref,   # GRU, gates concatenated (r|z|n) -> 3H wide
    wv_comb_ref, bv_comb_ref,             # fused v projection: [wv_att | wv_b[0] | ... ]  [V, HA+G*H]
    wq_comb_ref, bq_comb_ref,             # fused q projection: [wq_att | wq_b[0] | ... ]  [H, HA+G*H]
    hmat_ref,                             # [G, HA]
    wq_brest_ref,                         # [G-1, H, H]  BCNet q weights for glimpses 1..G-1 (residual term)
    wp_ref, bp_ref,                       # q_prj weights [G, H, H] / [G, 1, H]
    out_ref,      # [B, H]
):
    f32 = jnp.float32

    # ---- maml_v_emb: linear on the flattened image -> v_emb (num_objs = 1) ----
    v_feat = jnp.dot(x_ref[...], wm_ref[...], preferred_element_type=f32) + bm_ref[...]  # [B, V]

    # ---- QuestionEmbedding.forward_all: single-layer GRU, unrolled in-kernel ----
    # hoisted input projection for all timesteps at once: [S*B, E] @ [E, 3H]
    x_proj = jnp.dot(wemb_ref[...], wih_ref[...], preferred_element_type=f32) + bih_ref[...]
    whh = whh_ref[...]          # [H, 3H]
    bhh = bhh_ref[...]          # [1, 3H]

    h = jnp.zeros((B, H), f32)
    hs = []
    for t in range(S):                                    # S = 8, static unroll
        gx = x_proj[t * B:(t + 1) * B, :]                 # [B, 3H] (time-major rows contiguous)
        gh = jnp.dot(h, whh, preferred_element_type=f32) + bhh   # [B, 3H]
        r = jax.nn.sigmoid(gx[:, 0:H] + gh[:, 0:H])
        z = jax.nn.sigmoid(gx[:, H:2 * H] + gh[:, H:2 * H])
        n = jnp.tanh(gx[:, 2 * H:3 * H] + r * gh[:, 2 * H:3 * H])
        h = (1.0 - z) * n + z * h
        hs.append(h)
    # time-major flat q_emb (row = t*B + b), built entirely in vregs (no scratch scatter)
    q0_tm = jnp.concatenate(hs, axis=0)                   # [S*B, H]

    # ---- fused v-side projection: attention v_a + BCNet v_b for all glimpses ----
    v_proj = jax.nn.relu(
        jnp.dot(v_feat, wv_comb_ref[...], preferred_element_type=f32) + bv_comb_ref[...]
    )                                                     # [B, HA + G*H]
    v_a = v_proj[:, 0:HA]                                 # [B, HA]
    v_b_all = v_proj[:, HA:HA + G * H]                    # [B, G*H]

    # ---- fused q-side projection: attention q_a + BCNet q_b (of the ORIGINAL q_emb) ----
    q_lin = jnp.dot(q0_tm, wq_comb_ref[...], preferred_element_type=f32) + bq_comb_ref[...]  # [S*B, HA+G*H]
    q_a3 = jax.nn.relu(q_lin[:, 0:HA]).reshape(S, B, HA)  # [S, B, HA]

    # ---- BiAttention (v_att.forward_all): both glimpses' softmax done jointly ----
    # h_bias adds a per-glimpse constant -> softmax no-op; raw logits only feed counter (None).
    hmat = hmat_ref[...]                                  # [G, HA]
    lgs = []
    for g in range(G):
        vg = v_a * hmat[g:g + 1, :]                       # [B, HA]
        lgs.append(jnp.sum(q_a3 * vg[None, :, :], axis=-1))   # [S, B]
    lg_all = jnp.concatenate(lgs, axis=-1)                # [S, G*B]   (softmax over S per column)
    m = jnp.max(lg_all, axis=0, keepdims=True)
    p = jnp.exp(lg_all - m)
    att_all = p / jnp.sum(p, axis=0, keepdims=True)       # [S, G*B]

    # ---- glimpse loop: b_net[g].forward_with_weights + q_prj[g] residual ----
    wq_rest = wq_brest_ref[...]   # [G-1, H, H]
    wp_all = wp_ref[...]          # [G, H, H]
    bp_all = bp_ref[...]          # [G, 1, H]

    acc_prj = jnp.zeros((B, H), f32)                      # sum of q_prj outputs so far
    for g in range(G):
        # q_b for this glimpse = relu(q_cur @ wq_b[g] + bq_b[g])
        #                      = relu( (q0 @ wq_b[g] + bq_b[g])  +  acc_prj @ wq_b[g] )
        q_b_pre = q_lin[:, HA + g * H: HA + (g + 1) * H]  # [S*B, H]  (precomputed, off the serial chain)
        if g == 0:
            q_b3 = jax.nn.relu(q_b_pre).reshape(S, B, H)
        else:
            extra = jnp.dot(acc_prj, wq_rest[g - 1], preferred_element_type=f32)   # [B, H]
            q_b3 = jax.nn.relu(q_b_pre.reshape(S, B, H) + extra[None, :, :])
        att_g = att_all[:, g * B:(g + 1) * B]             # [S, B]
        # b_emb[b,d] = v_b[b,d] * sum_s att[s,b] * q_b[s,b,d]   (num_objs = 1)
        weighted = jnp.sum(att_g[:, :, None] * q_b3, axis=0)                  # [B, H]
        b_emb = v_b_all[:, g * H:(g + 1) * H] * weighted                       # [B, H]
        prj = jnp.dot(b_emb, wp_all[g], preferred_element_type=f32) + bp_all[g]  # [B, H]
        acc_prj = acc_prj + prj

    # q_emb.sum(1): each prj was broadcast over all S sequence positions
    q0_sum = jnp.sum(q0_tm.reshape(S, B, H), axis=0)      # [B, H]
    out_ref[...] = q0_sum + jnp.float32(S) * acc_prj


# ---------------- one-time weight packing (NOT per forward call) ----------------
def pack_params(params):
    (emb_table, wm, bm, wih, whh, bih, bhh,
     (wv_att, bv_att, wq_att, bq_att, hmat, hbias,
      wv_b, bv_b, wq_b, bq_b, wp, bp)) = params

    # GRU gate weights concatenated (r | z | n) along the output dim
    wih_cat = jnp.concatenate([wih[0], wih[1], wih[2]], axis=1)        # [E, 3H]
    whh_cat = jnp.concatenate([whh[0], whh[1], whh[2]], axis=1)        # [H, 3H]
    bih_cat = jnp.concatenate([bih[0], bih[1], bih[2]], axis=1)        # [1, 3H]
    bhh_cat = jnp.concatenate([bhh[0], bhh[1], bhh[2]], axis=1)        # [1, 3H]

    # fused v projection: attention + all BCNet glimpse v projections
    wv_comb = jnp.concatenate([wv_att] + [wv_b[g] for g in range(G)], axis=1)   # [V, HA+G*H]
    bv_comb = jnp.concatenate([bv_att] + [bv_b[g] for g in range(G)], axis=1)   # [1, HA+G*H]

    # fused q projection: attention + ALL BCNet glimpse q projections of q0
    wq_comb = jnp.concatenate([wq_att] + [wq_b[g] for g in range(G)], axis=1)   # [H, HA+G*H]
    bq_comb = jnp.concatenate([bq_att] + [bq_b[g] for g in range(G)], axis=1)   # [1, HA+G*H]

    wq_brest = wq_b[1:]                                                # [G-1, H, H]

    return (emb_table, wm, bm, wih_cat, bih_cat, whh_cat, bhh_cat,
            wv_comb, bv_comb, wq_comb, bq_comb, hmat, wq_brest, wp, bp)


# ---------------- wrapper: plain-JAX glue + fused pallas_call ----------------
def ban_model_forward(v_img, q_tokens, packed):
    (emb_table, wm, bm, wih_cat, bih_cat, whh_cat, bhh_cat,
     wv_comb, bv_comb, wq_comb, bq_comb, hmat, wq_brest, wp, bp) = packed

    # glue: flatten image; gather word embeddings directly in time-major flat layout
    x_flat = v_img.reshape(B, IMG)
    wemb_tm = jnp.take(emb_table, q_tokens.T.reshape(-1), axis=0)      # [S*B, E]

    # single grid-less pallas_call: all operands / intermediates fit comfortably in VMEM
    return pl.pallas_call(
        ban_fused_kernel,
        out_shape=jax.ShapeDtypeStruct((B, H), jnp.float32),
    )(x_flat, wemb_tm, wm, bm,
      wih_cat, bih_cat, whh_cat, bhh_cat,
      wv_comb, bv_comb, wq_comb, bq_comb, hmat,
      wq_brest, wp, bp)


# ---------------- pure-JAX reference for verification ----------------
def reference_forward(v_img, q_tokens, params):
    (emb_table, wm, bm, wih, whh, bih, bhh,
     (wv_att, bv_att, wq_att, bq_att, hmat, hbias,
      wv_b, bv_b, wq_b, bq_b, wp, bp)) = params
    hp = lambda a, b_: jnp.dot(a, b_, precision=jax.lax.Precision.HIGHEST)

    v_feat = hp(v_img.reshape(B, IMG), wm) + bm
    v_emb = v_feat[:, None, :]                    # [B, 1, V]
    w_emb = jnp.take(emb_table, q_tokens, axis=0)

    h = jnp.zeros((B, H), jnp.float32)
    outs = []
    for t in range(S):
        x = w_emb[:, t, :]
        r = jax.nn.sigmoid(hp(x, wih[0]) + bih[0] + hp(h, whh[0]) + bhh[0])
        z = jax.nn.sigmoid(hp(x, wih[1]) + bih[1] + hp(h, whh[1]) + bhh[1])
        n = jnp.tanh(hp(x, wih[2]) + bih[2] + r * (hp(h, whh[2]) + bhh[2]))
        h = (1.0 - z) * n + z * h
        outs.append(h)
    q_emb = jnp.stack(outs, axis=1)               # [B, S, H]

    v_a = jax.nn.relu(hp(v_emb, wv_att) + bv_att)  # [B, 1, HA]
    q_a = jax.nn.relu(hp(q_emb, wq_att) + bq_att)  # [B, S, HA]
    logits = jnp.einsum('bih,gh,bjh->bgij', v_a, hmat, q_a) + hbias[None, :, 0, None, None]
    att = jax.nn.softmax(logits.reshape(B, G, -1), axis=-1).reshape(B, G, 1, S)

    q_cur = q_emb
    for g in range(G):
        v_b = jax.nn.relu(hp(v_emb, wv_b[g]) + bv_b[g])
        q_b = jax.nn.relu(hp(q_cur, wq_b[g]) + bq_b[g])
        b_emb = jnp.einsum('bid,bij,bjd->bd', v_b, att[:, g], q_b)
        prj = hp(b_emb, wp[g]) + bp[g]
        q_cur = q_cur + prj[:, None, :]
    return q_cur.sum(axis=1)


# ---------------- deterministic parameter init ----------------
def init_params(key):
    ks = jax.random.split(key, 20)
    s = 0.1
    emb_table = jax.random.normal(ks[0], (VOCAB, E), jnp.float32) * s
    wm = jax.random.normal(ks[1], (IMG, V), jnp.float32) * s
    bm = jax.random.normal(ks[2], (1, V), jnp.float32) * s
    wih = jax.random.normal(ks[3], (3, E, H), jnp.float32) * s
    whh = jax.random.normal(ks[4], (3, H, H), jnp.float32) * s
    bih = jax.random.normal(ks[5], (3, 1, H), jnp.float32) * s
    bhh = jax.random.normal(ks[6], (3, 1, H), jnp.float32) * s
    wv_att = jax.random.normal(ks[7], (V, HA), jnp.float32) * s
    bv_att = jax.random.normal(ks[8], (1, HA), jnp.float32) * s
    wq_att = jax.random.normal(ks[9], (H, HA), jnp.float32) * s
    bq_att = jax.random.normal(ks[10], (1, HA), jnp.float32) * s
    hmat = jax.random.normal(ks[11], (G, HA), jnp.float32) * s
    hbias = jax.random.normal(ks[12], (G, 1), jnp.float32) * s
    wv_b = jax.random.normal(ks[13], (G, V, H), jnp.float32) * s
    bv_b = jax.random.normal(ks[14], (G, 1, H), jnp.float32) * s
    wq_b = jax.random.normal(ks[15], (G, H, H), jnp.float32) * s
    bq_b = jax.random.normal(ks[16], (G, 1, H), jnp.float32) * s
    wp = jax.random.normal(ks[17], (G, H, H), jnp.float32) * s
    bp = jax.random.normal(ks[18], (G, 1, H), jnp.float32) * s
    ban_params = (wv_att, bv_att, wq_att, bq_att, hmat, hbias,
                  wv_b, bv_b, wq_b, bq_b, wp, bp)
    return (emb_table, wm, bm, wih, whh, bih, bhh, ban_params)


if __name__ == "__main__":
    key = jax.random.PRNGKey(0)
    k_v, k_q, k_p = jax.random.split(key, 3)

    # v is the list [image]; q is token ids (as in the PyTorch forward)
    v_img = jax.random.normal(k_v, (B, 16, 16), jnp.float32)   # v[0]
    q_tokens = jax.random.randint(k_q, (B, S), 0, VOCAB)

    params = init_params(k_p)
    packed = pack_params(params)           # one-time weight packing (not per forward call)

    out = ban_model_forward(v_img, q_tokens, packed)
    out = jax.block_until_ready(out)
    assert out.shape == (B, H)

    ref = reference_forward(v_img, q_tokens, params)
    assert bool(jnp.allclose(out, ref, rtol=1e-2, atol=1e-2)), (
        f"mismatch: max abs diff = {float(jnp.max(jnp.abs(out - ref)))}"
    )
    # TODO(synk): autoencoder / counter / multi-maml branches are disabled by args
    # (autoencoder=False, counter=None, single maml net), matching a valid config.
    print("KERNEL_OK")
</pallas_src>

<mosaic_0001>
module attributes {stable_mosaic.version = 11 : i64} {
  func.func @ban_fused_kernel(%arg0: memref<2x256xf32, #tpu.memory_space<vmem>>, %arg1: memref<16x32xf32, #tpu.memory_space<vmem>>, %arg2: memref<256x32xf32, #tpu.memory_space<vmem>>, %arg3: memref<1x32xf32, #tpu.memory_space<vmem>>, %arg4: memref<32x96xf32, #tpu.memory_space<vmem>>, %arg5: memref<1x96xf32, #tpu.memory_space<vmem>>, %arg6: memref<32x96xf32, #tpu.memory_space<vmem>>, %arg7: memref<1x96xf32, #tpu.memory_space<vmem>>, %arg8: memref<32x96xf32, #tpu.memory_space<vmem>>, %arg9: memref<1x96xf32, #tpu.memory_space<vmem>>, %arg10: memref<32x96xf32, #tpu.memory_space<vmem>>, %arg11: memref<1x96xf32, #tpu.memory_space<vmem>>, %arg12: memref<2x32xf32, #tpu.memory_space<vmem>>, %arg13: memref<1x32x32xf32, #tpu.memory_space<vmem>>, %arg14: memref<2x32x32xf32, #tpu.memory_space<vmem>>, %arg15: memref<2x1x32xf32, #tpu.memory_space<vmem>>, %arg16: memref<2x32xf32, #tpu.memory_space<vmem>>) attributes {dimension_semantics = [], scalar_prefetch = 0 : i64, scratch_operands = 0 : i64, tpu.core_type = #tpu.core_type<tc>} {
    %c0 = arith.constant 0 : index
    %c0_0 = arith.constant 0 : index
    %0 = vector.load %arg0[%c0, %c0_0] : memref<2x256xf32, #tpu.memory_space<vmem>>, vector<2x256xf32>
    %c0_1 = arith.constant 0 : index
    %c0_2 = arith.constant 0 : index
    %1 = vector.load %arg2[%c0_1, %c0_2] : memref<256x32xf32, #tpu.memory_space<vmem>>, vector<256x32xf32>
    %cst = arith.constant dense<0.000000e+00> : vector<2x32xf32>
    %2 = tpu.matmul %0, %1, %cst {dimension_numbers = #tpu.dot_dimension_numbers<[1], [0], [0], [1], [0, 0, 1, 1], [], []>} : vector<2x256xf32>, vector<256x32xf32>, vector<2x32xf32> -> vector<2x32xf32>
    %c0_3 = arith.constant 0 : index
    %c0_4 = arith.constant 0 : index
    %3 = vector.load %arg3[%c0_3, %c0_4] : memref<1x32xf32, #tpu.memory_space<vmem>>, vector<1x32xf32>
    %4 = vector.broadcast %3 : vector<1x32xf32> to vector<2x32xf32>
    %5 = arith.addf %2, %4 : vector<2x32xf32>
    %c0_5 = arith.constant 0 : index
    %c0_6 = arith.constant 0 : index
    %6 = vector.load %arg1[%c0_5, %c0_6] : memref<16x32xf32, #tpu.memory_space<vmem>>, vector<16x32xf32>
    %c0_7 = arith.constant 0 : index
    %c0_8 = arith.constant 0 : index
    %7 = vector.load %arg4[%c0_7, %c0_8] : memref<32x96xf32, #tpu.memory_space<vmem>>, vector<32x96xf32>
    %cst_9 = arith.constant dense<0.000000e+00> : vector<16x96xf32>
    %8 = tpu.matmul %6, %7, %cst_9 {dimension_numbers = #tpu.dot_dimension_numbers<[1], [0], [0], [1], [0, 0, 1, 1], [], []>} : vector<16x32xf32>, vector<32x96xf32>, vector<16x96xf32> -> vector<16x96xf32>
    %c0_10 = arith.constant 0 : index
    %c0_11 = arith.constant 0 : index
    %9 = vector.load %arg5[%c0_10, %c0_11] : memref<1x96xf32, #tpu.memory_space<vmem>>, vector<1x96xf32>
    %10 = vector.broadcast %9 : vector<1x96xf32> to vector<16x96xf32>
    %11 = arith.addf %8, %10 : vector<16x96xf32>
    %c0_12 = arith.constant 0 : index
    %c0_13 = arith.constant 0 : index
    %12 = vector.load %arg6[%c0_12, %c0_13] : memref<32x96xf32, #tpu.memory_space<vmem>>, vector<32x96xf32>
    %c0_14 = arith.constant 0 : index
    %c0_15 = arith.constant 0 : index
    %13 = vector.load %arg7[%c0_14, %c0_15] : memref<1x96xf32, #tpu.memory_space<vmem>>, vector<1x96xf32>
    %cst_16 = arith.constant 0.000000e+00 : f32
    %14 = vector.broadcast %cst_16 : f32 to vector<2x32xf32>
    %15 = vector.extract_strided_slice %11 {offsets = [0, 0], sizes = [2, 96], strides = [1, 1]} : vector<16x96xf32> to vector<2x96xf32>
    %cst_17 = arith.constant dense<0.000000e+00> : vector<2x96xf32>
    %16 = tpu.matmul %14, %12, %cst_17 {dimension_numbers = #tpu.dot_dimension_numbers<[1], [0], [0], [1], [0, 0, 1, 1], [], []>} : vector<2x32xf32>, vector<32x96xf32>, vector<2x96xf32> -> vector<2x96xf32>
    %17 = vector.broadcast %13 : vector<1x96xf32> to vector<2x96xf32>
    %18 = arith.addf %16, %17 : vector<2x96xf32>
    %19 = vector.extract_strided_slice %15 {offsets = [0, 0], sizes = [2, 32], strides = [1, 1]} : vector<2x96xf32> to vector<2x32xf32>
    %20 = vector.extract_strided_slice %18 {offsets = [0, 0], sizes = [2, 32], strides = [1, 1]} : vector<2x96xf32> to vector<2x32xf32>
    %21 = arith.addf %19, %20 : vector<2x32xf32>
    %22 = arith.negf %21 : vector<2x32xf32>
    %23 = math.exp %22 : vector<2x32xf32>
    %cst_18 = arith.constant 1.000000e+00 : f32
    %24 = vector.broadcast %cst_18 : f32 to vector<2x32xf32>
    %25 = arith.addf %24, %23 : vector<2x32xf32>
    %26 = arith.divf %24, %25 : vector<2x32xf32>
    %27 = vector.extract_strided_slice %15 {offsets = [0, 32], sizes = [2, 32], strides = [1, 1]} : vector<2x96xf32> to vector<2x32xf32>
    %28 = vector.extract_strided_slice %18 {offsets = [0, 32], sizes = [2, 32], strides = [1, 1]} : vector<2x96xf32> to vector<2x32xf32>
    %29 = arith.addf %27, %28 : vector<2x32xf32>
    %30 = arith.negf %29 : vector<2x32xf32>
    %31 = math.exp %30 : vector<2x32xf32>
    %cst_19 = arith.constant 1.000000e+00 : f32
    %32 = vector.broadcast %cst_19 : f32 to vector<2x32xf32>
    %33 = arith.addf %32, %31 : vector<2x32xf32>
    %34 = arith.divf %32, %33 : vector<2x32xf32>
    %35 = vector.extract_strided_slice %15 {offsets = [0, 64], sizes = [2, 32], strides = [1, 1]} : vector<2x96xf32> to vector<2x32xf32>
    %36 = vector.extract_strided_slice %18 {offsets = [0, 64], sizes = [2, 32], strides = [1, 1]} : vector<2x96xf32> to vector<2x32xf32>
    %37 = arith.mulf %26, %36 : vector<2x32xf32>
    %38 = arith.addf %35, %37 : vector<2x32xf32>
    %39 = math.tanh %38 : vector<2x32xf32>
    %cst_20 = arith.constant 1.000000e+00 : f32
    %40 = vector.broadcast %cst_20 : f32 to vector<2x32xf32>
    %41 = arith.subf %40, %34 : vector<2x32xf32>
    %42 = arith.mulf %41, %39 : vector<2x32xf32>
    %43 = arith.mulf %34, %14 : vector<2x32xf32>
    %44 = arith.addf %42, %43 : vector<2x32xf32>
    %45 = vector.extract_strided_slice %11 {offsets = [2, 0], sizes = [2, 96], strides = [1, 1]} : vector<16x96xf32> to vector<2x96xf32>
    %cst_21 = arith.constant dense<0.000000e+00> : vector<2x96xf32>
    %46 = tpu.matmul %44, %12, %cst_21 {dimension_numbers = #tpu.dot_dimension_numbers<[1], [0], [0], [1], [0, 0, 1, 1], [], []>} : vector<2x32xf32>, vector<32x96xf32>, vector<2x96xf32> -> vector<2x96xf32>
    %47 = vector.broadcast %13 : vector<1x96xf32> to vector<2x96xf32>
    %48 = arith.addf %46, %47 : vector<2x96xf32>
    %49 = vector.extract_strided_slice %45 {offsets = [0, 0], sizes = [2, 32], strides = [1, 1]} : vector<2x96xf32> to vector<2x32xf32>
    %50 = vector.extract_strided_slice %48 {offsets = [0, 0], sizes = [2, 32], strides = [1, 1]} : vector<2x96xf32> to vector<2x32xf32>
    %51 = arith.addf %49, %50 : vector<2x32xf32>
    %52 = arith.negf %51 : vector<2x32xf32>
    %53 = math.exp %52 : vector<2x32xf32>
    %cst_22 = arith.constant 1.000000e+00 : f32
    %54 = vector.broadcast %cst_22 : f32 to vector<2x32xf32>
    %55 = arith.addf %54, %53 : vector<2x32xf32>
    %56 = arith.divf %54, %55 : vector<2x32xf32>
    %57 = vector.extract_strided_slice %45 {offsets = [0, 32], sizes = [2, 32], strides = [1, 1]} : vector<2x96xf32> to vector<2x32xf32>
    %58 = vector.extract_strided_slice %48 {offsets = [0, 32], sizes = [2, 32], strides = [1, 1]} : vector<2x96xf32> to vector<2x32xf32>
    %59 = arith.addf %57, %58 : vector<2x32xf32>
    %60 = arith.negf %59 : vector<2x32xf32>
    %61 = math.exp %60 : vector<2x32xf32>
    %cst_23 = arith.constant 1.000000e+00 : f32
    %62 = vector.broadcast %cst_23 : f32 to vector<2x32xf32>
    %63 = arith.addf %62, %61 : vector<2x32xf32>
    %64 = arith.divf %62, %63 : vector<2x32xf32>
    %65 = vector.extract_strided_slice %45 {offsets = [0, 64], sizes = [2, 32], strides = [1, 1]} : vector<2x96xf32> to vector<2x32xf32>
    %66 = vector.extract_strided_slice %48 {offsets = [0, 64], sizes = [2, 32], strides = [1, 1]} : vector<2x96xf32> to vector<2x32xf32>
    %67 = arith.mulf %56, %66 : vector<2x32xf32>
    %68 = arith.addf %65, %67 : vector<2x32xf32>
    %69 = math.tanh %68 : vector<2x32xf32>
    %cst_24 = arith.constant 1.000000e+00 : f32
    %70 = vector.broadcast %cst_24 : f32 to vector<2x32xf32>
    %71 = arith.subf %70, %64 : vector<2x32xf32>
    %72 = arith.mulf %71, %69 : vector<2x32xf32>
    %73 = arith.mulf %64, %44 : vector<2x32xf32>
    %74 = arith.addf %72, %73 : vector<2x32xf32>
    %75 = vector.extract_strided_slice %11 {offsets = [4, 0], sizes = [2, 96], strides = [1, 1]} : vector<16x96xf32> to vector<2x96xf32>
    %cst_25 = arith.constant dense<0.000000e+00> : vector<2x96xf32>
    %76 = tpu.matmul %74, %12, %cst_25 {dimension_numbers = #tpu.dot_dimension_numbers<[1], [0], [0], [1], [0, 0, 1, 1], [], []>} : vector<2x32xf32>, vector<32x96xf32>, vector<2x96xf32> -> vector<2x96xf32>
    %77 = vector.broadcast %13 : vector<1x96xf32> to vector<2x96xf32>
    %78 = arith.addf %76, %77 : vector<2x96xf32>
    %79 = vector.extract_strided_slice %75 {offsets = [0, 0], sizes = [2, 32], strides = [1, 1]} : vector<2x96xf32> to vector<2x32xf32>
    %80 = vector.extract_strided_slice %78 {offsets = [0, 0], sizes = [2, 32], strides = [1, 1]} : vector<2x96xf32> to vector<2x32xf32>
    %81 = arith.addf %79, %80 : vector<2x32xf32>
    %82 = arith.negf %81 : vector<2x32xf32>
    %83 = math.exp %82 : vector<2x32xf32>
    %cst_26 = arith.constant 1.000000e+00 : f32
    %84 = vector.broadcast %cst_26 : f32 to vector<2x32xf32>
    %85 = arith.addf %84, %83 : vector<2x32xf32>
    %86 = arith.divf %84, %85 : vector<2x32xf32>
    %87 = vector.extract_strided_slice %75 {offsets = [0, 32], sizes = [2, 32], strides = [1, 1]} : vector<2x96xf32> to vector<2x32xf32>
    %88 = vector.extract_strided_slice %78 {offsets = [0, 32], sizes = [2, 32], strides = [1, 1]} : vector<2x96xf32> to vector<2x32xf32>
    %89 = arith.addf %87, %88 : vector<2x32xf32>
    %90 = arith.negf %89 : vector<2x32xf32>
    %91 = math.exp %90 : vector<2x32xf32>
    %cst_27 = arith.constant 1.000000e+00 : f32
    %92 = vector.broadcast %cst_27 : f32 to vector<2x32xf32>
    %93 = arith.addf %92, %91 : vector<2x32xf32>
    %94 = arith.divf %92, %93 : vector<2x32xf32>
    %95 = vector.extract_strided_slice %75 {offsets = [0, 64], sizes = [2, 32], strides = [1, 1]} : vector<2x96xf32> to vector<2x32xf32>
    %96 = vector.extract_strided_slice %78 {offsets = [0, 64], sizes = [2, 32], strides = [1, 1]} : vector<2x96xf32> to vector<2x32xf32>
    %97 = arith.mulf %86, %96 : vector<2x32xf32>
    %98 = arith.addf %95, %97 : vector<2x32xf32>
    %99 = math.tanh %98 : vector<2x32xf32>
    %cst_28 = arith.constant 1.000000e+00 : f32
    %100 = vector.broadcast %cst_28 : f32 to vector<2x32xf32>
    %101 = arith.subf %100, %94 : vector<2x32xf32>
    %102 = arith.mulf %101, %99 : vector<2x32xf32>
    %103 = arith.mulf %94, %74 : vector<2x32xf32>
    %104 = arith.addf %102, %103 : vector<2x32xf32>
    %105 = vector.extract_strided_slice %11 {offsets = [6, 0], sizes = [2, 96], strides = [1, 1]} : vector<16x96xf32> to vector<2x96xf32>
    %cst_29 = arith.constant dense<0.000000e+00> : vector<2x96xf32>
    %106 = tpu.matmul %104, %12, %cst_29 {dimension_numbers = #tpu.dot_dimension_numbers<[1], [0], [0], [1], [0, 0, 1, 1], [], []>} : vector<2x32xf32>, vector<32x96xf32>, vector<2x96xf32> -> vector<2x96xf32>
    %107 = vector.broadcast %13 : vector<1x96xf32> to vector<2x96xf32>
    %108 = arith.addf %106, %107 : vector<2x96xf32>
    %109 = vector.extract_strided_slice %105 {offsets = [0, 0], sizes = [2, 32], strides = [1, 1]} : vector<2x96xf32> to vector<2x32xf32>
    %110 = vector.extract_strided_slice %108 {offsets = [0, 0], sizes = [2, 32], strides = [1, 1]} : vector<2x96xf32> to vector<2x32xf32>
    %111 = arith.addf %109, %110 : vector<2x32xf32>
    %112 = arith.negf %111 : vector<2x32xf32>
    %113 = math.exp %112 : vector<2x32xf32>
    %cst_30 = arith.constant 1.000000e+00 : f32
    %114 = vector.broadcast %cst_30 : f32 to vector<2x32xf32>
    %115 = arith.addf %114, %113 : vector<2x32xf32>
    %116 = arith.divf %114, %115 : vector<2x32xf32>
    %117 = vector.extract_strided_slice %105 {offsets = [0, 32], sizes = [2, 32], strides = [1, 1]} : vector<2x96xf32> to vector<2x32xf32>
    %118 = vector.extract_strided_slice %108 {offsets = [0, 32], sizes = [2, 32], strides = [1, 1]} : vector<2x96xf32> to vector<2x32xf32>
    %119 = arith.addf %117, %118 : vector<2x32xf32>
    %120 = arith.negf %119 : vector<2x32xf32>
    %121 = math.exp %120 : vector<2x32xf32>
    %cst_31 = arith.constant 1.000000e+00 : f32
    %122 = vector.broadcast %cst_31 : f32 to vector<2x32xf32>
    %123 = arith.addf %122, %121 : vector<2x32xf32>
    %124 = arith.divf %122, %123 : vector<2x32xf32>
    %125 = vector.extract_strided_slice %105 {offsets = [0, 64], sizes = [2, 32], strides = [1, 1]} : vector<2x96xf32> to vector<2x32xf32>
    %126 = vector.extract_strided_slice %108 {offsets = [0, 64], sizes = [2, 32], strides = [1, 1]} : vector<2x96xf32> to vector<2x32xf32>
    %127 = arith.mulf %116, %126 : vector<2x32xf32>
    %128 = arith.addf %125, %127 : vector<2x32xf32>
    %129 = math.tanh %128 : vector<2x32xf32>
    %cst_32 = arith.constant 1.000000e+00 : f32
    %130 = vector.broadcast %cst_32 : f32 to vector<2x32xf32>
    %131 = arith.subf %130, %124 : vector<2x32xf32>
    %132 = arith.mulf %131, %129 : vector<2x32xf32>
    %133 = arith.mulf %124, %104 : vector<2x32xf32>
    %134 = arith.addf %132, %133 : vector<2x32xf32>
    %135 = vector.extract_strided_slice %11 {offsets = [8, 0], sizes = [2, 96], strides = [1, 1]} : vector<16x96xf32> to vector<2x96xf32>
    %cst_33 = arith.constant dense<0.000000e+00> : vector<2x96xf32>
    %136 = tpu.matmul %134, %12, %cst_33 {dimension_numbers = #tpu.dot_dimension_numbers<[1], [0], [0], [1], [0, 0, 1, 1], [], []>} : vector<2x32xf32>, vector<32x96xf32>, vector<2x96xf32> -> vector<2x96xf32>
    %137 = vector.broadcast %13 : vector<1x96xf32> to vector<2x96xf32>
    %138 = arith.addf %136, %137 : vector<2x96xf32>
    %139 = vector.extract_strided_slice %135 {offsets = [0, 0], sizes = [2, 32], strides = [1, 1]} : vector<2x96xf32> to vector<2x32xf32>
    %140 = vector.extract_strided_slice %138 {offsets = [0, 0], sizes = [2, 32], strides = [1, 1]} : vector<2x96xf32> to vector<2x32xf32>
    %141 = arith.addf %139, %140 : vector<2x32xf32>
    %142 = arith.negf %141 : vector<2x32xf32>
    %143 = math.exp %142 : vector<2x32xf32>
    %cst_34 = arith.constant 1.000000e+00 : f32
    %144 = vector.broadcast %cst_34 : f32 to vector<2x32xf32>
    %145 = arith.addf %144, %143 : vector<2x32xf32>
    %146 = arith.divf %144, %145 : vector<2x32xf32>
    %147 = vector.extract_strided_slice %135 {offsets = [0, 32], sizes = [2, 32], strides = [1, 1]} : vector<2x96xf32> to vector<2x32xf32>
    %148 = vector.extract_strided_slice %138 {offsets = [0, 32], sizes = [2, 32], strides = [1, 1]} : vector<2x96xf32> to vector<2x32xf32>
    %149 = arith.addf %147, %148 : vector<2x32xf32>
    %150 = arith.negf %149 : vector<2x32xf32>
    %151 = math.exp %150 : vector<2x32xf32>
    %cst_35 = arith.constant 1.000000e+00 : f32
    %152 = vector.broadcast %cst_35 : f32 to vector<2x32xf32>
    %153 = arith.addf %152, %151 : vector<2x32xf32>
    %154 = arith.divf %152, %153 : vector<2x32xf32>
    %155 = vector.extract_strided_slice %135 {offsets = [0, 64], sizes = [2, 32], strides = [1, 1]} : vector<2x96xf32> to vector<2x32xf32>
    %156 = vector.extract_strided_slice %138 {offsets = [0, 64], sizes = [2, 32], strides = [1, 1]} : vector<2x96xf32> to vector<2x32xf32>
    %157 = arith.mulf %146, %156 : vector<2x32xf32>
    %158 = arith.addf %155, %157 : vector<2x32xf32>
    %159 = math.tanh %158 : vector<2x32xf32>
    %cst_36 = arith.constant 1.000000e+00 : f32
    %160 = vector.broadcast %cst_36 : f32 to vector<2x32xf32>
    %161 = arith.subf %160, %154 : vector<2x32xf32>
    %162 = arith.mulf %161, %159 : vector<2x32xf32>
    %163 = arith.mulf %154, %134 : vector<2x32xf32>
    %164 = arith.addf %162, %163 : vector<2x32xf32>
    %165 = vector.extract_strided_slice %11 {offsets = [10, 0], sizes = [2, 96], strides = [1, 1]} : vector<16x96xf32> to vector<2x96xf32>
    %cst_37 = arith.constant dense<0.000000e+00> : vector<2x96xf32>
    %166 = tpu.matmul %164, %12, %cst_37 {dimension_numbers = #tpu.dot_dimension_numbers<[1], [0], [0], [1], [0, 0, 1, 1], [], []>} : vector<2x32xf32>, vector<32x96xf32>, vector<2x96xf32> -> vector<2x96xf32>
    %167 = vector.broadcast %13 : vector<1x96xf32> to vector<2x96xf32>
    %168 = arith.addf %166, %167 : vector<2x96xf32>
    %169 = vector.extract_strided_slice %165 {offsets = [0, 0], sizes = [2, 32], strides = [1, 1]} : vector<2x96xf32> to vector<2x32xf32>
    %170 = vector.extract_strided_slice %168 {offsets = [0, 0], sizes = [2, 32], strides = [1, 1]} : vector<2x96xf32> to vector<2x32xf32>
    %171 = arith.addf %169, %170 : vector<2x32xf32>
    %172 = arith.negf %171 : vector<2x32xf32>
    %173 = math.exp %172 : vector<2x32xf32>
    %cst_38 = arith.constant 1.000000e+00 : f32
    %174 = vector.broadcast %cst_38 : f32 to vector<2x32xf32>
    %175 = arith.addf %174, %173 : vector<2x32xf32>
    %176 = arith.divf %174, %175 : vector<2x32xf32>
    %177 = vector.extract_strided_slice %165 {offsets = [0, 32], sizes = [2, 32], strides = [1, 1]} : vector<2x96xf32> to vector<2x32xf32>
    %178 = vector.extract_strided_slice %168 {offsets = [0, 32], sizes = [2, 32], strides = [1, 1]} : vector<2x96xf32> to vector<2x32xf32>
    %179 = arith.addf %177, %178 : vector<2x32xf32>
    %180 = arith.negf %179 : vector<2x32xf32>
    %181 = math.exp %180 : vector<2x32xf32>
    %cst_39 = arith.constant 1.000000e+00 : f32
    %182 = vector.broadcast %cst_39 : f32 to vector<2x32xf32>
    %183 = arith.addf %182, %181 : vector<2x32xf32>
    %184 = arith.divf %182, %183 : vector<2x32xf32>
    %185 = vector.extract_strided_slice %165 {offsets = [0, 64], sizes = [2, 32], strides = [1, 1]} : vector<2x96xf32> to vector<2x32xf32>
    %186 = vector.extract_strided_slice %168 {offsets = [0, 64], sizes = [2, 32], strides = [1, 1]} : vector<2x96xf32> to vector<2x32xf32>
    %187 = arith.mulf %176, %186 : vector<2x32xf32>
    %188 = arith.addf %185, %187 : vector<2x32xf32>
    %189 = math.tanh %188 : vector<2x32xf32>
    %cst_40 = arith.constant 1.000000e+00 : f32
    %190 = vector.broadcast %cst_40 : f32 to vector<2x32xf32>
    %191 = arith.subf %190, %184 : vector<2x32xf32>
    %192 = arith.mulf %191, %189 : vector<2x32xf32>
    %193 = arith.mulf %184, %164 : vector<2x32xf32>
    %194 = arith.addf %192, %193 : vector<2x32xf32>
    %195 = vector.extract_strided_slice %11 {offsets = [12, 0], sizes = [2, 96], strides = [1, 1]} : vector<16x96xf32> to vector<2x96xf32>
    %cst_41 = arith.constant dense<0.000000e+00> : vector<2x96xf32>
    %196 = tpu.matmul %194, %12, %cst_41 {dimension_numbers = #tpu.dot_dimension_numbers<[1], [0], [0], [1], [0, 0, 1, 1], [], []>} : vector<2x32xf32>, vector<32x96xf32>, vector<2x96xf32> -> vector<2x96xf32>
    %197 = vector.broadcast %13 : vector<1x96xf32> to vector<2x96xf32>
    %198 = arith.addf %196, %197 : vector<2x96xf32>
    %199 = vector.extract_strided_slice %195 {offsets = [0, 0], sizes = [2, 32], strides = [1, 1]} : vector<2x96xf32> to vector<2x32xf32>
    %200 = vector.extract_strided_slice %198 {offsets = [0, 0], sizes = [2, 32], strides = [1, 1]} : vector<2x96xf32> to vector<2x32xf32>
    %201 = arith.addf %199, %200 : vector<2x32xf32>
    %202 = arith.negf %201 : vector<2x32xf32>
    %203 = math.exp %202 : vector<2x32xf32>
    %cst_42 = arith.constant 1.000000e+00 : f32
    %204 = vector.broadcast %cst_42 : f32 to vector<2x32xf32>
    %205 = arith.addf %204, %203 : vector<2x32xf32>
    %206 = arith.divf %204, %205 : vector<2x32xf32>
    %207 = vector.extract_strided_slice %195 {offsets = [0, 32], sizes = [2, 32], strides = [1, 1]} : vector<2x96xf32> to vector<2x32xf32>
    %208 = vector.extract_strided_slice %198 {offsets = [0, 32], sizes = [2, 32], strides = [1, 1]} : vector<2x96xf32> to vector<2x32xf32>
    %209 = arith.addf %207, %208 : vector<2x32xf32>
    %210 = arith.negf %209 : vector<2x32xf32>
    %211 = math.exp %210 : vector<2x32xf32>
    %cst_43 = arith.constant 1.000000e+00 : f32
    %212 = vector.broadcast %cst_43 : f32 to vector<2x32xf32>
    %213 = arith.addf %212, %211 : vector<2x32xf32>
    %214 = arith.divf %212, %213 : vector<2x32xf32>
    %215 = vector.extract_strided_slice %195 {offsets = [0, 64], sizes = [2, 32], strides = [1, 1]} : vector<2x96xf32> to vector<2x32xf32>
    %216 = vector.extract_strided_slice %198 {offsets = [0, 64], sizes = [2, 32], strides = [1, 1]} : vector<2x96xf32> to vector<2x32xf32>
    %217 = arith.mulf %206, %216 : vector<2x32xf32>
    %218 = arith.addf %215, %217 : vector<2x32xf32>
    %219 = math.tanh %218 : vector<2x32xf32>
    %cst_44 = arith.constant 1.000000e+00 : f32
    %220 = vector.broadcast %cst_44 : f32 to vector<2x32xf32>
    %221 = arith.subf %220, %214 : vector<2x32xf32>
    %222 = arith.mulf %221, %219 : vector<2x32xf32>
    %223 = arith.mulf %214, %194 : vector<2x32xf32>
    %224 = arith.addf %222, %223 : vector<2x32xf32>
    %225 = vector.extract_strided_slice %11 {offsets = [14, 0], sizes = [2, 96], strides = [1, 1]} : vector<16x96xf32> to vector<2x96xf32>
    %cst_45 = arith.constant dense<0.000000e+00> : vector<2x96xf32>
    %226 = tpu.matmul %224, %12, %cst_45 {dimension_numbers = #tpu.dot_dimension_numbers<[1], [0], [0], [1], [0, 0, 1, 1], [], []>} : vector<2x32xf32>, vector<32x96xf32>, vector<2x96xf32> -> vector<2x96xf32>
    %227 = vector.broadcast %13 : vector<1x96xf32> to vector<2x96xf32>
    %228 = arith.addf %226, %227 : vector<2x96xf32>
    %229 = vector.extract_strided_slice %225 {offsets = [0, 0], sizes = [2, 32], strides = [1, 1]} : vector<2x96xf32> to vector<2x32xf32>
    %230 = vector.extract_strided_slice %228 {offsets = [0, 0], sizes = [2, 32], strides = [1, 1]} : vector<2x96xf32> to vector<2x32xf32>
    %231 = arith.addf %229, %230 : vector<2x32xf32>
    %232 = arith.negf %231 : vector<2x32xf32>
    %233 = math.exp %232 : vector<2x32xf32>
    %cst_46 = arith.constant 1.000000e+00 : f32
    %234 = vector.broadcast %cst_46 : f32 to vector<2x32xf32>
    %235 = arith.addf %234, %233 : vector<2x32xf32>
    %236 = arith.divf %234, %235 : vector<2x32xf32>
    %237 = vector.extract_strided_slice %225 {offsets = [0, 32], sizes = [2, 32], strides = [1, 1]} : vector<2x96xf32> to vector<2x32xf32>
    %238 = vector.extract_strided_slice %228 {offsets = [0, 32], sizes = [2, 32], strides = [1, 1]} : vector<2x96xf32> to vector<2x32xf32>
    %239 = arith.addf %237, %238 : vector<2x32xf32>
    %240 = arith.negf %239 : vector<2x32xf32>
    %241 = math.exp %240 : vector<2x32xf32>
    %cst_47 = arith.constant 1.000000e+00 : f32
    %242 = vector.broadcast %cst_47 : f32 to vector<2x32xf32>
    %243 = arith.addf %242, %241 : vector<2x32xf32>
    %244 = arith.divf %242, %243 : vector<2x32xf32>
    %245 = vector.extract_strided_slice %225 {offsets = [0, 64], sizes = [2, 32], strides = [1, 1]} : vector<2x96xf32> to vector<2x32xf32>
    %246 = vector.extract_strided_slice %228 {offsets = [0, 64], sizes = [2, 32], strides = [1, 1]} : vector<2x96xf32> to vector<2x32xf32>
    %247 = arith.mulf %236, %246 : vector<2x32xf32>
    %248 = arith.addf %245, %247 : vector<2x32xf32>
    %249 = math.tanh %248 : vector<2x32xf32>
    %cst_48 = arith.constant 1.000000e+00 : f32
    %250 = vector.broadcast %cst_48 : f32 to vector<2x32xf32>
    %251 = arith.subf %250, %244 : vector<2x32xf32>
    %252 = arith.mulf %251, %249 : vector<2x32xf32>
    %253 = arith.mulf %244, %224 : vector<2x32xf32>
    %254 = arith.addf %252, %253 : vector<2x32xf32>
    %255 = tpu.concatenate %44, %74, %104, %134, %164, %194, %224, %254 in 0 : vector<2x32xf32>, vector<2x32xf32>, vector<2x32xf32>, vector<2x32xf32>, vector<2x32xf32>, vector<2x32xf32>, vector<2x32xf32>, vector<2x32xf32> -> vector<16x32xf32>
    %c0_49 = arith.constant 0 : index
    %c0_50 = arith.constant 0 : index
    %256 = vector.load %arg8[%c0_49, %c0_50] : memref<32x96xf32, #tpu.memory_space<vmem>>, vector<32x96xf32>
    %cst_51 = arith.constant dense<0.000000e+00> : vector<2x96xf32>
    %257 = tpu.matmul %5, %256, %cst_51 {dimension_numbers = #tpu.dot_dimension_numbers<[1], [0], [0], [1], [0, 0, 1, 1], [], []>} : vector<2x32xf32>, vector<32x96xf32>, vector<2x96xf32> -> vector<2x96xf32>
    %c0_52 = arith.constant 0 : index
    %c0_53 = arith.constant 0 : index
    %258 = vector.load %arg9[%c0_52, %c0_53] : memref<1x96xf32, #tpu.memory_space<vmem>>, vector<1x96xf32>
    %259 = vector.broadcast %258 : vector<1x96xf32> to vector<2x96xf32>
    %260 = arith.addf %257, %259 : vector<2x96xf32>
    %cst_54 = arith.constant 0.000000e+00 : f32
    %261 = vector.broadcast %cst_54 : f32 to vector<2x96xf32>
    %262 = arith.maximumf %260, %261 : vector<2x96xf32>
    %263 = vector.extract_strided_slice %262 {offsets = [0, 0], sizes = [2, 32], strides = [1, 1]} : vector<2x96xf32> to vector<2x32xf32>
    %264 = vector.extract_strided_slice %262 {offsets = [0, 32], sizes = [2, 64], strides = [1, 1]} : vector<2x96xf32> to vector<2x64xf32>
    %c0_55 = arith.constant 0 : index
    %c0_56 = arith.constant 0 : index
    %265 = vector.load %arg10[%c0_55, %c0_56] : memref<32x96xf32, #tpu.memory_space<vmem>>, vector<32x96xf32>
    %cst_57 = arith.constant dense<0.000000e+00> : vector<16x96xf32>
    %266 = tpu.matmul %255, %265, %cst_57 {dimension_numbers = #tpu.dot_dimension_numbers<[1], [0], [0], [1], [0, 0, 1, 1], [], []>} : vector<16x32xf32>, vector<32x96xf32>, vector<16x96xf32> -> vector<16x96xf32>
    %c0_58 = arith.constant 0 : index
    %c0_59 = arith.constant 0 : index
    %267 = vector.load %arg11[%c0_58, %c0_59] : memref<1x96xf32, #tpu.memory_space<vmem>>, vector<1x96xf32>
    %268 = vector.broadcast %267 : vector<1x96xf32> to vector<16x96xf32>
    %269 = arith.addf %266, %268 : vector<16x96xf32>
    %270 = vector.extract_strided_slice %269 {offsets = [0, 0], sizes = [16, 32], strides = [1, 1]} : vector<16x96xf32> to vector<16x32xf32>
    %cst_60 = arith.constant 0.000000e+00 : f32
    %271 = vector.broadcast %cst_60 : f32 to vector<16x32xf32>
    %272 = arith.maximumf %270, %271 : vector<16x32xf32>
    %273 = vector.shape_cast %272 : vector<16x32xf32> to vector<8x2x32xf32>
    %c0_61 = arith.constant 0 : index
    %c0_62 = arith.constant 0 : index
    %274 = vector.load %arg12[%c0_61, %c0_62] : memref<2x32xf32, #tpu.memory_space<vmem>>, vector<2x32xf32>
    %275 = vector.extract_strided_slice %274 {offsets = [0, 0], sizes = [1, 32], strides = [1, 1]} : vector<2x32xf32> to vector<1x32xf32>
    %276 = vector.broadcast %275 : vector<1x32xf32> to vector<2x32xf32>
    %277 = arith.mulf %263, %276 : vector<2x32xf32>
    %278 = vector.shape_cast %277 : vector<2x32xf32> to vector<1x2x32xf32>
    %279 = vector.broadcast %278 : vector<1x2x32xf32> to vector<8x2x32xf32>
    %280 = arith.mulf %273, %279 : vector<8x2x32xf32>
    %cst_63 = arith.constant dense<0.000000e+00> : vector<8x2xf32>
    %281 = vector.multi_reduction <add>, %280, %cst_63 [2] : vector<8x2x32xf32> to vector<8x2xf32>
    %282 = vector.extract_strided_slice %274 {offsets = [1, 0], sizes = [1, 32], strides = [1, 1]} : vector<2x32xf32> to vector<1x32xf32>
    %283 = vector.broadcast %282 : vector<1x32xf32> to vector<2x32xf32>
    %284 = arith.mulf %263, %283 : vector<2x32xf32>
    %285 = vector.shape_cast %284 : vector<2x32xf32> to vector<1x2x32xf32>
    %286 = vector.broadcast %285 : vector<1x2x32xf32> to vector<8x2x32xf32>
    %287 = arith.mulf %273, %286 : vector<8x2x32xf32>
    %cst_64 = arith.constant dense<0.000000e+00> : vector<8x2xf32>
    %288 = vector.multi_reduction <add>, %287, %cst_64 [2] : vector<8x2x32xf32> to vector<8x2xf32>
    %289 = tpu.concatenate %281, %288 in 1 : vector<8x2xf32>, vector<8x2xf32> -> vector<8x4xf32>
    %cst_65 = arith.constant dense<0xFF800000> : vector<4xf32>
    %290 = vector.multi_reduction <maximumf>, %289, %cst_65 [0] : vector<8x4xf32> to vector<4xf32>
    %291 = vector.shape_cast %290 : vector<4xf32> to vector<1x4xf32>
    %292 = vector.broadcast %291 : vector<1x4xf32> to vector<8x4xf32>
    %293 = arith.subf %289, %292 : vector<8x4xf32>
    %294 = math.exp %293 : vector<8x4xf32>
    %cst_66 = arith.constant dense<0.000000e+00> : vector<4xf32>
    %295 = vector.multi_reduction <add>, %294, %cst_66 [0] : vector<8x4xf32> to vector<4xf32>
    %296 = vector.shape_cast %295 : vector<4xf32> to vector<1x4xf32>
    %297 = vector.broadcast %296 : vector<1x4xf32> to vector<8x4xf32>
    %298 = arith.divf %294, %297 : vector<8x4xf32>
    %c0_67 = arith.constant 0 : index
    %c0_68 = arith.constant 0 : index
    %c0_69 = arith.constant 0 : index
    %299 = vector.load %arg13[%c0_67, %c0_68, %c0_69] : memref<1x32x32xf32, #tpu.memory_space<vmem>>, vector<1x32x32xf32>
    %c0_70 = arith.constant 0 : index
    %c0_71 = arith.constant 0 : index
    %c0_72 = arith.constant 0 : index
    %300 = vector.load %arg14[%c0_70, %c0_71, %c0_72] : memref<2x32x32xf32, #tpu.memory_space<vmem>>, vector<2x32x32xf32>
    %c0_73 = arith.constant 0 : index
    %c0_74 = arith.constant 0 : index
    %c0_75 = arith.constant 0 : index
    %301 = vector.load %arg15[%c0_73, %c0_74, %c0_75] : memref<2x1x32xf32, #tpu.memory_space<vmem>>, vector<2x1x32xf32>
    %cst_76 = arith.constant 0.000000e+00 : f32
    %302 = vector.broadcast %cst_76 : f32 to vector<2x32xf32>
    %303 = vector.extract_strided_slice %269 {offsets = [0, 32], sizes = [16, 32], strides = [1, 1]} : vector<16x96xf32> to vector<16x32xf32>
    %cst_77 = arith.constant 0.000000e+00 : f32
    %304 = vector.broadcast %cst_77 : f32 to vector<16x32xf32>
    %305 = arith.maximumf %303, %304 : vector<16x32xf32>
    %306 = vector.shape_cast %305 : vector<16x32xf32> to vector<8x2x32xf32>
    %307 = vector.extract_strided_slice %298 {offsets = [0, 0], sizes = [8, 2], strides = [1, 1]} : vector<8x4xf32> to vector<8x2xf32>
    %308 = vector.shape_cast %307 : vector<8x2xf32> to vector<8x2x1xf32>
    %309 = vector.broadcast %308 : vector<8x2x1xf32> to vector<8x2x32xf32>
    %310 = arith.mulf %309, %306 : vector<8x2x32xf32>
    %cst_78 = arith.constant dense<0.000000e+00> : vector<2x32xf32>
    %311 = vector.multi_reduction <add>, %310, %cst_78 [0] : vector<8x2x32xf32> to vector<2x32xf32>
    %312 = vector.extract_strided_slice %264 {offsets = [0, 0], sizes = [2, 32], strides = [1, 1]} : vector<2x64xf32> to vector<2x32xf32>
    %313 = arith.mulf %312, %311 : vector<2x32xf32>
    %314 = vector.extract_strided_slice %300 {offsets = [0, 0, 0], sizes = [1, 32, 32], strides = [1, 1, 1]} : vector<2x32x32xf32> to vector<1x32x32xf32>
    %315 = vector.shape_cast %314 : vector<1x32x32xf32> to vector<32x32xf32>
    %cst_79 = arith.constant dense<0.000000e+00> : vector<2x32xf32>
    %316 = tpu.matmul %313, %315, %cst_79 {dimension_numbers = #tpu.dot_dimension_numbers<[1], [0], [0], [1], [0, 0, 1, 1], [], []>} : vector<2x32xf32>, vector<32x32xf32>, vector<2x32xf32> -> vector<2x32xf32>
    %317 = vector.extract_strided_slice %301 {offsets = [0, 0, 0], sizes = [1, 1, 32], strides = [1, 1, 1]} : vector<2x1x32xf32> to vector<1x1x32xf32>
    %318 = vector.shape_cast %317 : vector<1x1x32xf32> to vector<1x32xf32>
    %319 = vector.broadcast %318 : vector<1x32xf32> to vector<2x32xf32>
    %320 = arith.addf %316, %319 : vector<2x32xf32>
    %321 = arith.addf %302, %320 : vector<2x32xf32>
    %322 = vector.extract_strided_slice %269 {offsets = [0, 64], sizes = [16, 32], strides = [1, 1]} : vector<16x96xf32> to vector<16x32xf32>
    %323 = vector.shape_cast %299 : vector<1x32x32xf32> to vector<32x32xf32>
    %cst_80 = arith.constant dense<0.000000e+00> : vector<2x32xf32>
    %324 = tpu.matmul %321, %323, %cst_80 {dimension_numbers = #tpu.dot_dimension_numbers<[1], [0], [0], [1], [0, 0, 1, 1], [], []>} : vector<2x32xf32>, vector<32x32xf32>, vector<2x32xf32> -> vector<2x32xf32>
    %325 = vector.shape_cast %322 : vector<16x32xf32> to vector<8x2x32xf32>
    %326 = vector.shape_cast %324 : vector<2x32xf32> to vector<1x2x32xf32>
    %327 = vector.broadcast %326 : vector<1x2x32xf32> to vector<8x2x32xf32>
    %328 = arith.addf %325, %327 : vector<8x2x32xf32>
    %cst_81 = arith.constant 0.000000e+00 : f32
    %329 = vector.broadcast %cst_81 : f32 to vector<8x2x32xf32>
    %330 = arith.maximumf %328, %329 : vector<8x2x32xf32>
    %331 = vector.extract_strided_slice %298 {offsets = [0, 2], sizes = [8, 2], strides = [1, 1]} : vector<8x4xf32> to vector<8x2xf32>
    %332 = vector.shape_cast %331 : vector<8x2xf32> to vector<8x2x1xf32>
    %333 = vector.broadcast %332 : vector<8x2x1xf32> to vector<8x2x32xf32>
    %334 = arith.mulf %333, %330 : vector<8x2x32xf32>
    %cst_82 = arith.constant dense<0.000000e+00> : vector<2x32xf32>
    %335 = vector.multi_reduction <add>, %334, %cst_82 [0] : vector<8x2x32xf32> to vector<2x32xf32>
    %336 = vector.extract_strided_slice %264 {offsets = [0, 32], sizes = [2, 32], strides = [1, 1]} : vector<2x64xf32> to vector<2x32xf32>
    %337 = arith.mulf %336, %335 : vector<2x32xf32>
    %338 = vector.extract_strided_slice %300 {offsets = [1, 0, 0], sizes = [1, 32, 32], strides = [1, 1, 1]} : vector<2x32x32xf32> to vector<1x32x32xf32>
    %339 = vector.shape_cast %338 : vector<1x32x32xf32> to vector<32x32xf32>
    %cst_83 = arith.constant dense<0.000000e+00> : vector<2x32xf32>
    %340 = tpu.matmul %337, %339, %cst_83 {dimension_numbers = #tpu.dot_dimension_numbers<[1], [0], [0], [1], [0, 0, 1, 1], [], []>} : vector<2x32xf32>, vector<32x32xf32>, vector<2x32xf32> -> vector<2x32xf32>
    %341 = vector.extract_strided_slice %301 {offsets = [1, 0, 0], sizes = [1, 1, 32], strides = [1, 1, 1]} : vector<2x1x32xf32> to vector<1x1x32xf32>
    %342 = vector.shape_cast %341 : vector<1x1x32xf32> to vector<1x32xf32>
    %343 = vector.broadcast %342 : vector<1x32xf32> to vector<2x32xf32>
    %344 = arith.addf %340, %343 : vector<2x32xf32>
    %345 = arith.addf %321, %344 : vector<2x32xf32>
    %346 = vector.shape_cast %255 : vector<16x32xf32> to vector<8x2x32xf32>
    %cst_84 = arith.constant dense<0.000000e+00> : vector<2x32xf32>
    %347 = vector.multi_reduction <add>, %346, %cst_84 [0] : vector<8x2x32xf32> to vector<2x32xf32>
    %cst_85 = arith.constant 8.000000e+00 : f32
    %348 = vector.broadcast %cst_85 : f32 to vector<2x32xf32>
    %349 = arith.mulf %348, %345 : vector<2x32xf32>
    %350 = arith.addf %347, %349 : vector<2x32xf32>
    %c0_86 = arith.constant 0 : index
    %c0_87 = arith.constant 0 : index
    %351 = vector.load %arg16[%c0_86, %c0_87] : memref<2x32xf32, #tpu.memory_space<vmem>>, vector<2x32xf32>
    tpu.vector_store %arg16[%c0_86, %c0_87], %350 {strides = array<i32>} : memref<2x32xf32, #tpu.memory_space<vmem>>, vector<2x32xf32>,
    return
  }
}

</mosaic_0001>

<bundles_post_ra>
// kernel: tpu_custom_call.1
= control target key start
LH: loop header
LB: loop body
LE: loop exit
PB: predicated region body
PF: predicated region fallthrough
CT: control target
= control target key end

     0   :  { %s3488_s0 = inlined_call_operand.vmem [shape: f32[2,256], index: 0, kind: input, shape index: {}]   ;;  %s3489_s1 = inlined_call_operand.vmem [shape: f32[16,32], index: 1, kind: input, shape index: {}]   ;;  %s3490_s2 = inlined_call_operand.vmem [shape: f32[256,32], index: 2, kind: input, shape index: {}]   ;;  %s3491_s3 = inlined_call_operand.vmem [shape: f32[1,32], index: 3, kind: input, shape index: {}]   ;;  %s3492_s4 = inlined_call_operand.vmem [shape: f32[32,96], index: 4, kind: input, shape index: {}]   ;;  %s3493_s5 = inlined_call_operand.vmem [shape: f32[1,96], index: 5, kind: input, shape index: {}]   ;;  %s3494_s6 = inlined_call_operand.vmem [shape: f32[32,96], index: 6, kind: input, shape index: {}]   ;;  %s3495_s7 = inlined_call_operand.vmem [shape: f32[1,96], index: 7, kind: input, shape index: {}]   ;;  %s3496_s8 = inlined_call_operand.vmem [shape: f32[32,96], index: 8, kind: input, shape index: {}]   ;;  %s3497_s9 = inlined_call_operand.vmem [shape: f32[1,96], index: 9, kind: input, shape index: {}]   ;;  %s3498_s10 = inlined_call_operand.vmem [shape: f32[32,96], index: 10, kind: input, shape index: {}]   ;;  %s3499_s11 = inlined_call_operand.vmem [shape: f32[1,96], index: 11, kind: input, shape index: {}]   ;;  %s3500_s12 = inlined_call_operand.vmem [shape: f32[2,32], index: 12, kind: input, shape index: {}]   ;;  %s3501_s13 = inlined_call_operand.vmem [shape: f32[1,32,32], index: 13, kind: input, shape index: {}]   ;;  %s3502_s14 = inlined_call_operand.vmem [shape: f32[2,32,32], index: 14, kind: input, shape index: {}]   ;;  %s3503_s15 = inlined_call_operand.vmem [shape: f32[2,1,32], index: 15, kind: input, shape index: {}]   ;;  %s3504_s16 = inlined_call_operand.hbm [shape: f32[2,32], index: 16, kind: output, shape index: {}]  }
   0x1   :  { %3505 = sst [smem:[#allocation5_spill]] %s3488_s0 }
   0x2   :  { %v177_v0 = vld [vmem:[%s3492_s4] sm:$0xff]  ;;  %v178_v1 = vld [vmem:[%s3492_s4 + $0x8] sm:$0xff]  ;;  %v179_v2 = vld [vmem:[%s3492_s4 + $0x10] sm:$0xff]  ;;  %vm188_vm0 = vcmask 261120  }
   0x3   :  { %v2598_v3 = vpack.c.bf16 %v178_v1, %v177_v0  ;;  %v180_v4 = vld [vmem:[%s3492_s4 + $0x18] sm:$0xff]  ;;  %v175_v5 = vld [vmem:[%s3489_s1] sm:$0xff] }
   0x4   :  { %v2602_v6 = vpack.c.bf16 %v180_v4, %v179_v2  ;;  %2420 = vmatprep.mubr.msk.f32.mxu1 %vm188_vm0, %v175_v5 }
   0x5   :  { %2599 = vmatprep.subr.bf16.mxu1 %v2598_v3 }
   0x6   :  { %21 = vsyncpa [#allocation3], 0  ;;  %2601 = vmatpush3.bf16.msra.mxu1 %v2598_v3  ;;  %v270_v7 = vld [vmem:[%s3494_s6] sm:$0xff]  ;;  %v271_v8 = vld [vmem:[%s3494_s6 + $0x8] sm:$0xff]  ;;  %v2770_v11 = vmov 0.0|0.0   ;;  %vm2771_vm1 = vmmov 0  }
   0x7   :  { %2603 = vmatprep.subr.bf16.mxu1 %v2602_v6  ;;  %v176_v9 = vld [vmem:[%s3489_s1 + $0x8] sm:$0xff]  ;;  %v2888_v10 = vpack.c.bf16 %v271_v8, %v270_v7  ;;  %v272_v12 = vld [vmem:[%s3494_s6 + $0x10] sm:$0xff]  ;;  %v273_v13 = vld [vmem:[%s3494_s6 + $0x18] sm:$0xff]  ;;  %v2772_v15 = vmov 0.0   ;;  %s2773_s27 = smov 64   ;;  %s3506_s29 = sld [smem:[#allocation5_spill]] }
   0x8   :  { %v2899_v14 = vpack.c.bf16 %v273_v13, %v272_v12  ;;  %v2276_v16 = vld [vmem:[%s3493_s5] ss:$0 sm:$0xff]  ;;  %s2774_s5 = smov 96   ;;  %vm1117_vm2 = vcmask 1041408   ;;  %vm1119_vm3 = vcmask 1043456   ;;  %vm1121_vm4 = vcmask 1045504  }
   0x9   :  { %v2921_v20 = vld [vmem:[%s3495_s7] ss:$0 sm:$0xff]  ;;  %vm1367_vm5 = vcmask 254976   ;;  %vm1471_vm6 = vcmask 1041409   ;;  %vm1473_vm7 = vcmask 1042434   ;;  %vm1475_vm8 = vcmask 1043459  }
   0xa   :  { %2605 = vmatpush3.bf16.msra.mxu1 %v2602_v6  ;;  %vm1477_vm9 = vcmask 1044484   ;;  %vm1479_vm10 = vcmask 1045509   ;;  %vm1481_vm11 = vcmask 1046534   ;;  %vm1483_vm12 = vcmask 1047559  }
   0xb   :  { %2606 = vmatprep.subr.bf16.mxu1 %v2770_v11  ;;  %vm1535_vm13 = vcmask 15360   ;;  %vm1537_vm14 = vcmask 31744   ;;  %vm2233_vm15 = vcmask 517376  }
   0xd   :  { %2421 = vmatmul.mubr.msk.f32.vlgmr.msra.gmra.mrb[0].mxu1 %vm188_vm0, %v176_v9 }
   0xe   :  { %2608 = vmatpush3.bf16.msra.mxu1 %v2888_v10  ;;  %2431 = vmatprep.mubr.msk.f32.mxu1 %vm2771_vm1, %v2772_v15 }
   0xf   :  { %2609 = vmatprep.subr.bf16.mxu1 %v2770_v11 }
  0x12   :  { %2611 = vmatpush3.bf16.msra.mxu1 %v2899_v14 }
  0x13   :  { %2612 = vmatprep.subr.bf16.mxu1 %v2770_v11 }
  0x15   :  { %2432 = vmatmul.mubr.f32.vlgmr.msra.gmra.mrb[2].mxu1 %v2772_v15 }
  0x16   :  { %2614 = vmatpush3.bf16.msra.mxu1 %v2888_v10  ;;  %2442 = vmatprep.mubr.msk.f32.mxu1 %vm2771_vm1, %v2772_v15 }
  0x17   :  { %2615 = vmatprep.subr.bf16.mxu1 %v2770_v11 }
  0x1a   :  { %2617 = vmatpush3.bf16.msra.mxu1 %v2899_v14 }
  0x1b   :  { %2618 = vmatprep.subr.bf16.mxu1 %v2770_v11 }
  0xe0   :  { %v2422_v17 = vpop.f32.mrb[0].mxu1 }
  0xe1   :  { %v2916_v18 = vadd.f32 %v2422_v17, %v2276_v16  ;;  %v261_v19 = vpop.f32.mrb[1].mxu1  ;;  %v72_v17 = vld [vmem:[%s3490_s2 + $0x88] sm:$0xff] }
  0xe2   :  { %v2925_v24 = vadd.f32 %v2276_v16, %v261_v19  ;;  %v71_v16 = vld [vmem:[%s3490_s2 + $0x80] sm:$0xff] }
  0xe3   :  { %v55_v19 = vld [vmem:[%s3490_s2] sm:$0xff] }
  0xe8   :  { %v350_v21 = vpop.f32.mrb[2].mxu1 }
  0xe9   :  { %v351_v22 = vadd.f32 %v2921_v20, %v350_v21  ;;  %v2433_v23 = vpop.f32.mrb[3].mxu1  ;;  %v2566_v21 = vpack.c.bf16 %v72_v17, %v71_v16 }
  0xea   :  { %v73_v23 = vld [vmem:[%s3490_s2 + $0x90] sm:$0xff] }
  0xeb   :  { %362 = vrot.lane.b32.xlu0 %v351_v22, %s2773_s27  ;;  %v354_v25 = vadd.f32 %v351_v22, %v2925_v24  ;;  %v56_v22 = vld [vmem:[%s3490_s2 + $0x8] sm:$0xff]  ;;  %2567 = vmatprep.subr.bf16.mxu0 %v2566_v21 }
  0xed   :  { %v2280_v26 = vmul.f32 -1.442695, %v354_v25  ;;  %v74_v25 = vld [vmem:[%s3490_s2 + $0x98] sm:$0xff] }
  0xef   :  { %2694 = vpow2.f32 %v2280_v26  ;;  %v2568_v26 = vpack.c.bf16 %v56_v22, %v55_v19 }
  0xf1   :  { %2569 = vmatpush3.bf16.msra.mxu0 %v2568_v26 }
  0xf9   :  { %v2695_v27 = vpop.eup %2694 }
  0xfa   :  { %v358_v28 = vadd.f32 1.0, %v2695_v27  ;;  %v2570_v27 = vpack.c.bf16 %v74_v25, %v73_v23 }
  0xfc   :  { %2696 = vrcp.f32 %v358_v28  ;;  %v57_v28 = vld [vmem:[%s3490_s2 + $0x10] sm:$0xff]  ;;  %2571 = vmatprep.subr.bf16.mxu0 %v2570_v27 }
 0x106   :  { %v2697_v29 = vpop.eup %2696 }
 0x107   :  { %v372_v35 = vsub.f32 1.0, %v2697_v29  ;;  %v378_v37 = vmul.f32 0.0, %v2697_v29 }
 0x15d   :  { %v363_v30 = vpop.permute.xlu0 %362 }
 0x15e   :  { %v365_v31 = vmul.f32 %v2697_v29, %v363_v30  ;;  %v58_v29 = vld [vmem:[%s3490_s2 + $0x18] sm:$0xff]  ;;  %v75_v30 = vld [vmem:[%s3490_s2 + $0xa0] sm:$0xff] }
 0x160   :  { %367 = vrot.lane.b32.xlu0 %v365_v31, %s2773_s27  ;;  %v76_v31 = vld [vmem:[%s3490_s2 + $0xa8] sm:$0xff] }
 0x1d2   :  { %v368_v32 = vpop.permute.xlu0 %367 }
 0x1d3   :  { %v370_v33 = vadd.f32 %v368_v32, %v2925_v24  ;;  %v2572_v32 = vpack.c.bf16 %v58_v29, %v57_v28 }
 0x1d5   :  { %2698 = vtanh.f32 %v370_v33  ;;  %v2574_v33 = vpack.c.bf16 %v76_v31, %v75_v30  ;;  %2573 = vmatpush3.bf16.msra.mxu0 %v2572_v32 }
 0x1d7   :  { %2575 = vmatprep.subr.bf16.mxu0 %v2574_v33 }
 0x1df   :  { %v2699_v34 = vpop.eup %2698 }
 0x1e0   :  { %374 = vrot.lane.b32.xlu1 %v2699_v34, %s2774_s5  ;;  %v59_v34 = vld [vmem:[%s3490_s2 + $0x20] sm:$0xff] }
 0x252   :  { %v375_v36 = vpop.permute.xlu1 %374 }
 0x253   :  { %v377_v38 = vmul.f32 %v375_v36, %v372_v35  ;;  %v60_v35 = vld [vmem:[%s3490_s2 + $0x28] sm:$0xff] }
 0x255   :  { %v2931_v39 = vadd.f32 %v378_v37, %v377_v38  ;;  %v77_v37 = vld [vmem:[%s3490_s2 + $0xb0] sm:$0xff]  ;;  %v78_v38 = vld [vmem:[%s3490_s2 + $0xb8] sm:$0xff] }
 0x257   :  { %381 = vrot.lane.b32.xlu1 %v2931_v39, %s2774_s5  ;;  %v481_v56 = vrot.slane %v2931_v39, 6 }
 0x2c9   :  { %v382_v40 = vpop.permute.xlu1 %381 }
 0x2ca   :  { %2443 = vmatmul.mubr.msk.f32.vlgmr.msra.gmra.mrb[4].mxu1 %vm188_vm0, %v382_v40  ;;  %v2576_v40 = vpack.c.bf16 %v60_v35, %v59_v34 }
 0x2cb   :  { %2620 = vmatpush3.bf16.msra.mxu1 %v2888_v10  ;;  %2453 = vmatprep.mubr.msk.f32.mxu1 %vm2771_vm1, %v2772_v15 }
 0x2cc   :  { %2621 = vmatprep.subr.bf16.mxu1 %v2770_v11  ;;  %2577 = vmatpush3.bf16.msra.mxu0 %v2576_v40 }
 0x2cf   :  { %2623 = vmatpush3.bf16.msra.mxu1 %v2899_v14 }
 0x2d0   :  { %2630 = vmatprep.subr.bf16.mxu1 %v2770_v11 }
 0x39d   :  { %v451_v41 = vpop.f32.mrb[4].mxu1 }
 0x39e   :  { %v452_v42 = vadd.f32 %v2921_v20, %v451_v41  ;;  %v2444_v43 = vpop.f32.mrb[5].mxu1  ;;  %v2578_v41 = vpack.c.bf16 %v78_v38, %v77_v37 }
 0x39f   :  { %v62_v43 = vld [vmem:[%s3490_s2 + $0x38] sm:$0xff] }
 0x3a0   :  { %v456_v44 = vrot.slane %v452_v42, 6  ;;  %v61_v42 = vld [vmem:[%s3490_s2 + $0x30] sm:$0xff]  ;;  %2579 = vmatprep.subr.bf16.mxu0 %v2578_v41 }
 0x3a2   :  { %465 = vrot.lane.b32.xlu0 %v456_v44, %s2773_s27  ;;  %v458_v45 = vadd.f32 %v456_v44, %v2925_v24  ;;  %v79_v44 = vld [vmem:[%s3490_s2 + $0xc0] sm:$0xff] }
 0x3a4   :  { %v2282_v46 = vmul.f32 -1.442695, %v458_v45  ;;  %v80_v45 = vld [vmem:[%s3490_s2 + $0xc8] sm:$0xff] }
 0x3a6   :  { %2700 = vpow2.f32 %v2282_v46  ;;  %v2275_v46 = vld.sshfl [vmem:[%s3506_s29] sm:$0x33 pattern:$0x76325410] }
 0x3b0   :  { %v2701_v47 = vpop.eup %2700 }
 0x3b1   :  { %v462_v48 = vadd.f32 1.0, %v2701_v47  ;;  %v102_v47 = vcombine.high %v2275_v46, %v2275_v46 }
 0x3b3   :  { %2702 = vrcp.f32 %v462_v48  ;;  %v2580_v48 = vpack.c.bf16 %v62_v43, %v61_v42  ;;  %169 = vmatprep.mubr.f32.mxu0 %v102_v47 }
 0x3b5   :  { %2581 = vmatpush3.bf16.msra.mxu0 %v2580_v48 }
 0x3bd   :  { %v2703_v49 = vpop.eup %2702 }
 0x3be   :  { %v475_v55 = vsub.f32 1.0, %v2703_v49  ;;  %v483_v59 = vmul.f32 %v2703_v49, %v481_v56  ;;  %v65_v56 = vld [vmem:[%s3490_s2 + $0x50] sm:$0xff] }
 0x414   :  { %v466_v50 = vpop.permute.xlu0 %465 }
 0x415   :  { %v468_v51 = vmul.f32 %v2703_v49, %v466_v50  ;;  %v2582_v49 = vpack.c.bf16 %v80_v45, %v79_v44  ;;  %v63_v50 = vld [vmem:[%s3490_s2 + $0x40] sm:$0xff] }
 0x417   :  { %470 = vrot.lane.b32.xlu1 %v468_v51, %s2773_s27  ;;  %v64_v51 = vld [vmem:[%s3490_s2 + $0x48] sm:$0xff]  ;;  %2583 = vmatprep.subr.bf16.mxu0 %v2582_v49 }
 0x489   :  { %v471_v52 = vpop.permute.xlu1 %470 }
 0x48a   :  { %v473_v53 = vadd.f32 %v471_v52, %v2925_v24  ;;  %v81_v52 = vld [vmem:[%s3490_s2 + $0xd0] sm:$0xff] }
 0x48c   :  { %2704 = vtanh.f32 %v473_v53  ;;  %v82_v53 = vld [vmem:[%s3490_s2 + $0xd8] sm:$0xff] }
 0x496   :  { %v2705_v54 = vpop.eup %2704 }
 0x497   :  { %477 = vrot.lane.b32.xlu0 %v2705_v54, %s2774_s5  ;;  %v2584_v54 = vpack.c.bf16 %v64_v51, %v63_v50 }
 0x499   :  { %2585 = vmatpush3.bf16.msra.mxu0 %v2584_v54 }
 0x509   :  { %v478_v57 = vpop.permute.xlu0 %477 }
 0x50a   :  { %v480_v58 = vmul.f32 %v478_v57, %v475_v55  ;;  %v2586_v55 = vpack.c.bf16 %v82_v53, %v81_v52  ;;  %v66_v57 = vld [vmem:[%s3490_s2 + $0x58] sm:$0xff] }
 0x50c   :  { %v2949_v60 = vadd.f32 %v483_v59, %v480_v58  ;;  %v83_v58 = vld [vmem:[%s3490_s2 + $0xe0] sm:$0xff]  ;;  %v84_v59 = vld [vmem:[%s3490_s2 + $0xe8] sm:$0xff]  ;;  %2587 = vmatprep.subr.bf16.mxu0 %v2586_v55 }
 0x50e   :  { %v486_v61 = vrot.slane %v2949_v60, 2  ;;  %v1118_v21 = vsel %vm1117_vm2, %v2931_v39, %v2949_v60 }
 0x510   :  { %487 = vrot.lane.b32.xlu1 %v486_v61, %s2774_s5  ;;  %v2588_v61 = vpack.c.bf16 %v66_v57, %v65_v56 }
 0x512   :  { %2589 = vmatpush3.bf16.msra.mxu0 %v2588_v61 }
 0x582   :  { %v488_v62 = vpop.permute.xlu1 %487 }
 0x583   :  { %2454 = vmatmul.mubr.msk.f32.vlgmr.msra.gmra.mrb[6].mxu1 %vm188_vm0, %v488_v62  ;;  %v2590_v62 = vpack.c.bf16 %v84_v59, %v83_v58 }
 0x584   :  { %2632 = vmatpush3.bf16.msra.mxu1 %v2888_v10  ;;  %2475 = vmatprep.mubr.msk.f32.mxu1 %vm2771_vm1, %v2772_v15 }
 0x585   :  { %2633 = vmatprep.subr.bf16.mxu1 %v2770_v11  ;;  %2591 = vmatprep.subr.bf16.mxu0 %v2590_v62 }
 0x588   :  { %2635 = vmatpush3.bf16.msra.mxu1 %v2899_v14 }
 0x589   :  { %2642 = vmatprep.subr.bf16.mxu1 %v2770_v11 }
 0x656   :  { %v557_v63 = vpop.f32.mrb[6].mxu1 }
 0x657   :  { %v558_v0 = vadd.f32 %v2921_v20, %v557_v63  ;;  %v2455_v1 = vpop.f32.mrb[7].mxu1  ;;  %v67_v63 = vld [vmem:[%s3490_s2 + $0x60] sm:$0xff] }
 0x658   :  { %v85_v1 = vld [vmem:[%s3490_s2 + $0xf0] sm:$0xff] }
 0x659   :  { %v562_v2 = vrot.slane %v558_v0, 4  ;;  %v68_v0 = vld [vmem:[%s3490_s2 + $0x68] sm:$0xff] }
 0x65b   :  { %571 = vrot.lane.b32.xlu0 %v562_v2, %s2773_s27  ;;  %v564_v3 = vadd.f32 %v562_v2, %v2925_v24  ;;  %v86_v2 = vld [vmem:[%s3490_s2 + $0xf8] sm:$0xff] }
 0x65d   :  { %v2284_v4 = vmul.f32 -1.442695, %v564_v3  ;;  %v2592_v3 = vpack.c.bf16 %v68_v0, %v67_v63 }
 0x65f   :  { %2706 = vpow2.f32 %v2284_v4  ;;  %v2594_v4 = vpack.c.bf16 %v86_v2, %v85_v1  ;;  %2593 = vmatpush3.bf16.msra.mxu0 %v2592_v3 }
 0x661   :  { %2595 = vmatprep.subr.bf16.mxu0 %v2594_v4 }
 0x669   :  { %v2707_v5 = vpop.eup %2706 }
 0x66a   :  { %v568_v6 = vadd.f32 1.0, %v2707_v5  ;;  %v69_v5 = vld [vmem:[%s3490_s2 + $0x70] sm:$0xff] }
 0x66c   :  { %2708 = vrcp.f32 %v568_v6  ;;  %v70_v6 = vld [vmem:[%s3490_s2 + $0x78] sm:$0xff] }
 0x676   :  { %v2963_v7 = vpop.eup %2708 }
 0x6cd   :  { %v572_v8 = vpop.permute.xlu0 %571 }
 0x6ce   :  { %v574_v9 = vmul.f32 %v2963_v7, %v572_v8  ;;  %v2596_v8 = vpack.c.bf16 %v70_v6, %v69_v5 }
 0x6d0   :  { %576 = vrot.lane.b32.xlu1 %v574_v9, %s2773_s27  ;;  %2597 = vmatpush3.bf16.msra.mxu0 %v2596_v8  ;;  %v581_v9 = vsub.f32 1.0, %v2963_v7 }
 0x6d1   :  { %2624 = vmatprep.subr.bf16.mxu0 %v2770_v11 }
 0x6d3   :  { %170 = vmatmul.mubr.f32.vlgmr.msra.gmra.mrb[0].mxu0 %v2275_v46 }
 0x6d4   :  { %2626 = vmatpush3.bf16.msra.mxu0 %v2888_v10  ;;  %2464 = vmatprep.mubr.msk.f32.mxu0 %vm2771_vm1, %v2772_v15 }
 0x6d5   :  { %2627 = vmatprep.subr.bf16.mxu0 %v2770_v11 }
 0x6d8   :  { %2629 = vmatpush3.bf16.msra.mxu0 %v2899_v14 }
 0x6d9   :  { %2636 = vmatprep.subr.bf16.mxu0 %v2770_v11 }
 0x742   :  { %v577_v12 = vpop.permute.xlu1 %576 }
 0x743   :  { %v579_v13 = vadd.f32 %v577_v12, %v2925_v24  ;;  %v587_v12 = vrot.slane %v2949_v60, 6 }
 0x745   :  { %2710 = vtanh.f32 %v579_v13  ;;  %v589_v16 = vmul.f32 %v2963_v7, %v587_v12 }
 0x74f   :  { %v2711_v36 = vpop.eup %2710 }
 0x750   :  { %583 = vrot.lane.b32.xlu0 %v2711_v36, %s2774_s5 }
 0x7a6   :  { %v2337_v7 = vpop.f32.mrb[0].mxu0 }
 0x7a7   :  { %v2338_v26 = vpop.f32.mrb[1].mxu0 }
 0x7a8   :  { %v3088_v27 = vadd.f32 %v2338_v26, %v2337_v7 }
 0x7c2   :  { %v584_v13 = vpop.permute.xlu0 %583 }
 0x7c3   :  { %v586_v17 = vmul.f32 %v584_v13, %v581_v9 }
 0x7c5   :  { %v590_v19 = vadd.f32 %v589_v16, %v586_v17 }
 0x7c7   :  { %v592_v22 = vrot.slane %v590_v19, 4  ;;  %v1120_v23 = vsel %vm1119_vm3, %v1118_v21, %v590_v19  ;;  %v693_v42 = vrot.slane %v590_v19, 6 }
 0x7c9   :  { %593 = vrot.lane.b32.xlu1 %v592_v22, %s2774_s5 }
 0x83b   :  { %v594_v25 = vpop.permute.xlu1 %593 }
 0x83c   :  { %2465 = vmatmul.mubr.msk.f32.vlgmr.msra.gmra.mrb[2].mxu0 %vm188_vm0, %v594_v25 }
 0x83d   :  { %2638 = vmatpush3.bf16.msra.mxu0 %v2888_v10  ;;  %2486 = vmatprep.mubr.msk.f32.mxu0 %vm2771_vm1, %v2772_v15 }
 0x83e   :  { %2639 = vmatprep.subr.bf16.mxu0 %v2770_v11 }
 0x841   :  { %2641 = vmatpush3.bf16.msra.mxu0 %v2899_v14 }
 0x842   :  { %2648 = vmatprep.subr.bf16.mxu0 %v2770_v11 }
 0x90f   :  { %v663_v39 = vpop.f32.mrb[2].mxu0 }
 0x910   :  { %v664_v60 = vadd.f32 %v2921_v20, %v663_v39  ;;  %v2466_v28 = vpop.f32.mrb[3].mxu0 }
 0x912   :  { %v668_v29 = vrot.slane %v664_v60, 2 }
 0x914   :  { %677 = vrot.lane.b32.xlu0 %v668_v29, %s2773_s27  ;;  %v670_v30 = vadd.f32 %v668_v29, %v2925_v24 }
 0x916   :  { %v2286_v31 = vmul.f32 -1.442695, %v670_v30  ;;  %v1126_v30 = vld [vmem:[%s3496_s8] sm:$0xff] }
 0x918   :  { %2712 = vpow2.f32 %v2286_v31  ;;  %v1127_v31 = vld [vmem:[%s3496_s8 + $0x8] sm:$0xff] }
 0x922   :  { %v2713_v32 = vpop.eup %2712 }
 0x923   :  { %v674_v33 = vadd.f32 1.0, %v2713_v32  ;;  %v2655_v32 = vpack.c.bf16 %v1127_v31, %v1126_v30 }
 0x925   :  { %2714 = vrcp.f32 %v674_v33  ;;  %v1128_v33 = vld [vmem:[%s3496_s8 + $0x10] sm:$0xff] }
 0x92f   :  { %v2715_v34 = vpop.eup %2714 }
 0x930   :  { %v687_v41 = vsub.f32 1.0, %v2715_v34  ;;  %v695_v44 = vmul.f32 %v2715_v34, %v693_v42 }
 0x986   :  { %v678_v35 = vpop.permute.xlu0 %677 }
 0x987   :  { %v680_v36 = vmul.f32 %v2715_v34, %v678_v35  ;;  %v1129_v34 = vld [vmem:[%s3496_s8 + $0x18] sm:$0xff] }
 0x989   :  { %682 = vrot.lane.b32.xlu1 %v680_v36, %s2773_s27  ;;  %v2658_v36 = vpack.c.bf16 %v1129_v34, %v1128_v33  ;;  %v1315_v33 = vlaneseq  ;;  %v2295_v34 = vld [vmem:[%s3497_s9] ss:$0 sm:$0xff]  ;;  %s2776_s9 = smov 32  }
 0x9fb   :  { %v683_v37 = vpop.permute.xlu1 %682 }
 0x9fc   :  { %v685_v38 = vadd.f32 %v683_v37, %v2925_v24  ;;  %v2274_v37 = vld [vmem:[%s3491_s3] ss:$0 sm:$0xff] }
 0x9fe   :  { %2716 = vtanh.f32 %v685_v38  ;;  %v172_v38 = vadd.f32 %v3088_v27, %v2274_v37  ;;  %v3204_v37 = vshrl.u32 %v1315_v33, 7 }
 0xa08   :  { %v2717_v40 = vpop.eup %2716 }
 0xa09   :  { %689 = vrot.lane.b32.xlu0 %v2717_v40, %s2774_s5 }
 0xa7b   :  { %v690_v43 = vpop.permute.xlu0 %689 }
 0xa7c   :  { %v692_v45 = vmul.f32 %v690_v43, %v687_v41 }
 0xa7e   :  { %v696_v46 = vadd.f32 %v695_v44, %v692_v45 }
 0xa80   :  { %v698_v47 = vrot.slane %v696_v46, 6  ;;  %v3099_v48 = vsel %vm1121_vm4, %v1120_v23, %v696_v46 }
 0xa82   :  { %699 = vrot.lane.b32.xlu1 %v698_v47, %s2774_s5 }
 0xaf4   :  { %v700_v49 = vpop.permute.xlu1 %699 }
 0xaf5   :  { %2476 = vmatmul.mubr.msk.f32.vlgmr.msra.gmra.mrb[8].mxu1 %vm188_vm0, %v700_v49 }
 0xaf6   :  { %2644 = vmatpush3.bf16.msra.mxu1 %v2888_v10  ;;  %2497 = vmatprep.mubr.msk.f32.mxu1 %vm2771_vm1, %v2772_v15 }
 0xaf7   :  { %2645 = vmatprep.subr.bf16.mxu1 %v2770_v11 }
 0xafa   :  { %2647 = vmatpush3.bf16.msra.mxu1 %v2899_v14 }
 0xafb   :  { %2654 = vmatprep.subr.bf16.mxu1 %v2770_v11 }
 0xbc8   :  { %v769_v24 = vpop.f32.mrb[8].mxu1 }
 0xbc9   :  { %v770_v50 = vadd.f32 %v2921_v20, %v769_v24  ;;  %v2477_v51 = vpop.f32.mrb[9].mxu1 }
 0xbcb   :  { %781 = vrot.lane.b32.xlu0 %v770_v50, %s2773_s27  ;;  %v773_v52 = vadd.f32 %v770_v50, %v2916_v18 }
 0xbcd   :  { %v2288_v53 = vmul.f32 -1.442695, %v773_v52 }
 0xbcf   :  { %2718 = vpow2.f32 %v2288_v53 }
 0xbd9   :  { %v2719_v54 = vpop.eup %2718 }
 0xbda   :  { %v777_v55 = vadd.f32 1.0, %v2719_v54 }
 0xbdc   :  { %2720 = vrcp.f32 %v777_v55 }
 0xbe6   :  { %v2721_v56 = vpop.eup %2720 }
 0xbe7   :  { %v791_v63 = vsub.f32 1.0, %v2721_v56  ;;  %v798_v1 = vmul.f32 %v2721_v56, %v698_v47 }
 0xc3d   :  { %v782_v57 = vpop.permute.xlu0 %781 }
 0xc3e   :  { %v784_v58 = vmul.f32 %v2721_v56, %v782_v57 }
 0xc40   :  { %786 = vrot.lane.b32.xlu1 %v784_v58, %s2773_s27 }
 0xcb2   :  { %v787_v59 = vpop.permute.xlu1 %786 }
 0xcb3   :  { %v789_v61 = vadd.f32 %v787_v59, %v2916_v18 }
 0xcb5   :  { %2722 = vtanh.f32 %v789_v61 }
 0xcbf   :  { %v2723_v62 = vpop.eup %2722 }
 0xcc0   :  { %793 = vrot.lane.b32.xlu0 %v2723_v62, %s2774_s5 }
 0xd32   :  { %v794_v0 = vpop.permute.xlu0 %793 }
 0xd33   :  { %v796_v2 = vmul.f32 %v794_v0, %v791_v63 }
 0xd35   :  { %v3115_v3 = vadd.f32 %v798_v1, %v796_v2 }
 0xd37   :  { %801 = vrot.lane.b32.xlu1 %v3115_v3, %s2774_s5  ;;  %v901_v7 = vrot.slane %v3115_v3, 6 }
 0xda9   :  { %v802_v4 = vpop.permute.xlu1 %801 }
 0xdaa   :  { %2487 = vmatmul.mubr.msk.f32.vlgmr.msra.gmra.mrb[4].mxu0 %vm188_vm0, %v802_v4 }
 0xdab   :  { %2650 = vmatpush3.bf16.msra.mxu0 %v2888_v10  ;;  %2508 = vmatprep.mubr.msk.f32.mxu0 %vm2771_vm1, %v2772_v15 }
 0xdac   :  { %2651 = vmatprep.subr.bf16.mxu0 %v2770_v11 }
 0xdaf   :  { %2653 = vmatpush3.bf16.msra.mxu0 %v2899_v14 }
 0xe7d   :  { %v871_v5 = vpop.f32.mrb[4].mxu0 }
 0xe7e   :  { %v872_v6 = vadd.f32 %v2921_v20, %v871_v5  ;;  %v2488_v8 = vpop.f32.mrb[5].mxu0 }
 0xe80   :  { %v876_v9 = vrot.slane %v872_v6, 6 }
 0xe82   :  { %885 = vrot.lane.b32.xlu0 %v876_v9, %s2773_s27  ;;  %v878_v12 = vadd.f32 %v876_v9, %v2916_v18 }
 0xe84   :  { %v2290_v13 = vmul.f32 -1.442695, %v878_v12 }
 0xe86   :  { %2724 = vpow2.f32 %v2290_v13 }
 0xe90   :  { %v2725_v16 = vpop.eup %2724 }
 0xe91   :  { %v882_v10 = vadd.f32 1.0, %v2725_v16 }
 0xe93   :  { %2726 = vrcp.f32 %v882_v10 }
 0xe9d   :  { %v2727_v17 = vpop.eup %2726 }
 0xe9e   :  { %v895_v25 = vsub.f32 1.0, %v2727_v17  ;;  %v903_v39 = vmul.f32 %v2727_v17, %v901_v7 }
 0xef4   :  { %v886_v19 = vpop.permute.xlu0 %885 }
 0xef5   :  { %v888_v21 = vmul.f32 %v2727_v17, %v886_v19 }
 0xef7   :  { %890 = vrot.lane.b32.xlu1 %v888_v21, %s2773_s27  ;;  %v1211_v21 = vld [vmem:[%s3498_s10] sm:$0xff] }
 0xf69   :  { %v891_v14 = vpop.permute.xlu1 %890 }
 0xf6a   :  { %v893_v22 = vadd.f32 %v891_v14, %v2916_v18  ;;  %v1212_v14 = vld [vmem:[%s3498_s10 + $0x8] sm:$0xff] }
 0xf6c   :  { %2728 = vtanh.f32 %v893_v22  ;;  %v1213_v22 = vld [vmem:[%s3498_s10 + $0x10] sm:$0xff] }
 0xf76   :  { %v2729_v23 = vpop.eup %2728 }
 0xf77   :  { %897 = vrot.lane.b32.xlu0 %v2729_v23, %s2774_s5  ;;  %v2660_v23 = vpack.c.bf16 %v1212_v14, %v1211_v21 }
 0xf79   :  { %2661 = vmatprep.subr.bf16.mxu0 %v2660_v23 }
 0xfe9   :  { %v898_v26 = vpop.permute.xlu0 %897 }
 0xfea   :  { %v900_v60 = vmul.f32 %v898_v26, %v895_v25 }
 0xfec   :  { %v904_v28 = vadd.f32 %v903_v39, %v900_v60 }
 0xfee   :  { %v906_v29 = vrot.slane %v904_v28, 2  ;;  %v1007_v56 = vrot.slane %v904_v28, 6  ;;  %v1123_v62 = vsel %vm1117_vm2, %v3115_v3, %v904_v28 }
 0xff0   :  { %907 = vrot.lane.b32.xlu1 %v906_v29, %s2774_s5 }
0x1062   :  { %v908_v35 = vpop.permute.xlu1 %907 }
0x1063   :  { %2498 = vmatmul.mubr.msk.f32.vlgmr.msra.gmra.mrb[10].mxu1 %vm188_vm0, %v908_v35  ;;  %v2775_v35 = vmov 1983009808  }
0x1064   :  { %2656 = vmatpush3.bf16.msra.mxu1 %v2655_v32  ;;  %2519 = vmatprep.mubr.msk.f32.mxu1 %vm2771_vm1, %v2772_v15 }
0x1065   :  { %2657 = vmatprep.subr.bf16.mxu1 %v2770_v11 }
0x1068   :  { %2659 = vmatpush3.bf16.msra.mxu1 %v2658_v36  ;;  %v1313_v36 = vunpack.c.l.s4 %v2775_v35 }
0x1069   :  { %2668 = vmatprep.subr.bf16.mxu1 %v2770_v11 }
0x106b   :  { %2520 = vmatmul.mubr.msk.f32.vlgmr.msra.gmra.mrb[12].mxu1 %vm188_vm0, %v172_v38 }
0x106c   :  { %2541 = vmatprep.mubr.msk.f32.mxu1 %vm2771_vm1, %v2772_v15 }
0x1136   :  { %v977_v40 = vpop.f32.mrb[10].mxu1 }
0x1137   :  { %v978_v41 = vadd.f32 %v2921_v20, %v977_v40  ;;  %v2499_v42 = vpop.f32.mrb[11].mxu1  ;;  %v1356_v40 = vsub.s32 0, %v3204_v37 }
0x1138   :  { %v1353_v42 = vld [vmem:[%s3500_s12] sm:$0x3] }
0x1139   :  { %v982_v43 = vrot.slane %v978_v41, 4  ;;  %v1394_v41 = vsub.s32 1, %v3204_v37 }
0x113b   :  { %991 = vrot.lane.b32.xlu0 %v982_v43, %s2773_s27  ;;  %v984_v46 = vadd.f32 %v982_v43, %v2916_v18  ;;  %v2297_v43 = vld [vmem:[%s3499_s11] ss:$0 sm:$0xff] }
0x113d   :  { %v2292_v27 = vmul.f32 -1.442695, %v984_v46 }
0x113e   :  { %v3159_v44 = vpop.f32.mrb[12].mxu1 }
0x113f   :  { %v2521_v45 = vpop.f32.mrb[13].mxu1  ;;  %2730 = vpow2.f32 %v2292_v27  ;;  %v1207_v38 = vadd.f32 %v2295_v34, %v3159_v44  ;;  %v1395_v44 = vrot.slane %v1353_v42, %v1394_v41 }
0x1140   :  { %v1314_v45 = vunpack.c.0.s8 %v1313_v36 }
0x1141   :  { %v3215_v27 = vmax.f32 %v1207_v38, 0.0 }
0x1149   :  { %v2731_v47 = vpop.eup %2730 }
0x114a   :  { %v988_v49 = vadd.f32 1.0, %v2731_v47  ;;  %v1357_v47 = vrot.slane %v1353_v42, %v1356_v40 }
0x114c   :  { %2732 = vrcp.f32 %v988_v49 }
0x1156   :  { %v2733_v24 = vpop.eup %2732 }
0x1157   :  { %v1001_v55 = vsub.f32 1.0, %v2733_v24  ;;  %v1009_v58 = vmul.f32 %v2733_v24, %v1007_v56 }
0x11ad   :  { %v992_v50 = vpop.permute.xlu0 %991 }
0x11ae   :  { %v994_v51 = vmul.f32 %v2733_v24, %v992_v50 }
0x11b0   :  { %996 = vrot.lane.b32.xlu1 %v994_v51, %s2773_s27  ;;  %v3226_v51 = vsub.s32 %v1314_v45, %v3204_v37 }
0x1222   :  { %v997_v52 = vpop.permute.xlu1 %996 }
0x1223   :  { %v999_v53 = vadd.f32 %v997_v52, %v2916_v18 }
0x1225   :  { %2734 = vtanh.f32 %v999_v53 }
0x122f   :  { %v2735_v54 = vpop.eup %2734 }
0x1230   :  { %1003 = vrot.lane.b32.xlu0 %v2735_v54, %s2774_s5  ;;  %v1358_v54 = vmul.f32 %v1357_v47, %v3215_v27 }
0x12a2   :  { %v1004_v57 = vpop.permute.xlu0 %1003 }
0x12a3   :  { %v1006_v59 = vmul.f32 %v1004_v57, %v1001_v55  ;;  %v1396_v55 = vmul.f32 %v1395_v44, %v3215_v27 }
0x12a5   :  { %v1010_v61 = vadd.f32 %v1009_v58, %v1006_v59 }
0x12a7   :  { %v1012_v63 = vrot.slane %v1010_v61, 4  ;;  %v1124_v0 = vsel %vm1119_vm3, %v1123_v62, %v1010_v61  ;;  %v1113_v39 = vrot.slane %v1010_v61, 6 }
0x12a9   :  { %1013 = vrot.lane.b32.xlu1 %v1012_v63, %s2774_s5 }
0x131b   :  { %v1014_v1 = vpop.permute.xlu1 %1013 }
0x131c   :  { %2509 = vmatmul.mubr.msk.f32.vlgmr.msra.gmra.mrb[6].mxu0 %vm188_vm0, %v1014_v1 }
0x131d   :  { %2663 = vmatpush3.bf16.msra.mxu0 %v2660_v23 }
0x13ef   :  { %v1083_v2 = vpop.f32.mrb[6].mxu0 }
0x13f0   :  { %v1084_v4 = vadd.f32 %v2921_v20, %v1083_v2  ;;  %v2510_v5 = vpop.f32.mrb[7].mxu0 }
0x13f2   :  { %v1088_v6 = vrot.slane %v1084_v4, 2 }
0x13f4   :  { %1097 = vrot.lane.b32.xlu0 %v1088_v6, %s2773_s27  ;;  %v1090_v8 = vadd.f32 %v1088_v6, %v2916_v18 }
0x13f6   :  { %v2294_v9 = vmul.f32 -1.442695, %v1090_v8 }
0x13f8   :  { %2736 = vpow2.f32 %v2294_v9 }
0x1402   :  { %v2737_v3 = vpop.eup %2736 }
0x1403   :  { %v1094_v12 = vadd.f32 1.0, %v2737_v3 }
0x1405   :  { %2738 = vrcp.f32 %v1094_v12 }
0x140f   :  { %v2739_v13 = vpop.eup %2738 }
0x1410   :  { %v1107_v26 = vsub.f32 1.0, %v2739_v13  ;;  %v1115_v28 = vmul.f32 %v2739_v13, %v1113_v39 }
0x1466   :  { %v1098_v16 = vpop.permute.xlu0 %1097 }
0x1467   :  { %v1100_v10 = vmul.f32 %v2739_v13, %v1098_v16 }
0x1469   :  { %1102 = vrot.lane.b32.xlu1 %v1100_v10, %s2773_s27 }
0x146d   :  { %1224 = vrot.lane.b32.xlu1 %v3099_v48, %s2774_s5 }
0x14db   :  { %v1103_v20 = vpop.permute.xlu1 %1102 }
0x14dc   :  { %v1105_v17 = vadd.f32 %v1103_v20, %v2916_v18  ;;  %v1214_v18 = vld [vmem:[%s3498_s10 + $0x18] sm:$0xff] }
0x14dd   :  { %v2664_v25 = vpack.c.bf16 %v1214_v18, %v1213_v22 }
0x14de   :  { %2740 = vtanh.f32 %v1105_v17 }
0x14df   :  { %v1225_v19 = vpop.permute.xlu1 %1224  ;;  %2665 = vmatprep.subr.bf16.mxu0 %v2664_v25 }
0x14e0   :  { %2530 = vmatprep.mubr.msk.f32.mxu0 %vm188_vm0, %v1225_v19  ;;  %2667 = vmatpush3.bf16.msra.mxu0 %v2664_v25 }
0x14e1   :  { %2674 = vmatprep.subr.bf16.mxu0 %v2770_v11 }
0x14e8   :  { %v2741_v7 = vpop.eup %2740 }
0x14e9   :  { %1109 = vrot.lane.b32.xlu0 %v2741_v7, %s2774_s5 }
0x155b   :  { %v1110_v60 = vpop.permute.xlu0 %1109 }
0x155c   :  { %v1112_v29 = vmul.f32 %v1110_v60, %v1107_v26 }
0x155e   :  { %v1116_v30 = vadd.f32 %v1115_v28, %v1112_v29 }
0x1560   :  { %v3193_v31 = vsel %vm1121_vm4, %v1124_v0, %v1116_v30 }
0x1561   :  { %1226 = vrot.lane.b32.xlu0 %v3193_v31, %s2774_s5 }
0x15d3   :  { %v1227_v32 = vpop.permute.xlu0 %1226 }
0x15d4   :  { %2531 = vmatmul.mubr.msk.f32.vlgmr.msra.gmra.mrb[8].mxu0 %vm188_vm0, %v1227_v32 }
0x15d5   :  { %2552 = vmatprep.mubr.msk.f32.mxu0 %vm2771_vm1, %v2772_v15 }
0x16a7   :  { %v2532_v46 = vpop.f32.mrb[8].mxu0 }
0x16a8   :  { %v3221_v49 = vadd.f32 %v2532_v46, %v2297_v43  ;;  %v1298_v24 = vpop.f32.mrb[9].mxu0 }
0x16a9   :  { %v3223_v50 = vadd.f32 %v2297_v43, %v1298_v24 }
0x16aa   :  { %v1308_v52 = vmax.f32 %v3221_v49, 0.0 }
0x16ab   :  { %v1307_v53 = vmax.f32 %v3223_v50, 0.0 }
0x16ac   :  { %v3233_v56 = vrot.slane %v1308_v52, %v3226_v51  ;;  %v1328_v61 = vcombine.high %v1308_v52, %v1308_v52 }
0x16ad   :  { %v1318_v57 = vrot.slane %v1307_v53, %v3226_v51  ;;  %v1311_v3 = vcombine.high %v1307_v53, %v1307_v53 }
0x16ae   :  { %v1401_v58 = vmul.f32 %v1396_v55, %v3233_v56  ;;  %v1363_v59 = vmul.f32 %v1358_v54, %v3233_v56  ;;  %v3240_v62 = vcombine.high %v3233_v56, %v3233_v56  ;;  %v3245_v4 = vrot.slane %v1328_v61, %v3226_v51 }
0x16af   :  { %v1397_v1 = vmul.f32 %v1396_v55, %v1318_v57  ;;  %v1359_v2 = vmul.f32 %v1358_v54, %v1318_v57  ;;  %v1326_v12 = vcombine.high %v1318_v57, %v1318_v57  ;;  %v1325_v17 = vrot.slane %v1311_v3, %v3226_v51 }
0x16b0   :  { %v1417_v63 = vsel %vm1367_vm5, %v1401_v58, 0.0  ;;  %v1380_v0 = vsel %vm1367_vm5, %v1363_v59, 0.0  ;;  %v1364_v8 = vmul.f32 %v1358_v54, %v3240_v62  ;;  %v1402_v9 = vmul.f32 %v1396_v55, %v3240_v62 }
0x16b1   :  { %1418 = vadd.xlane.f32.xlu1 %v1417_v63  ;;  %1381 = vadd.xlane.f32.xlu0 %v1380_v0  ;;  %v1405_v5 = vsel %vm1367_vm5, %v1397_v1, 0.0  ;;  %v1368_v6 = vsel %vm1367_vm5, %v1359_v2, 0.0  ;;  %v1365_v10 = vmul.f32 %v1358_v54, %v3245_v4  ;;  %v1403_v20 = vmul.f32 %v1396_v55, %v3245_v4 }
0x16b2   :  { %v1383_v13 = vsel %vm1367_vm5, %v1364_v8, 0.0  ;;  %v1420_v16 = vsel %vm1367_vm5, %v1402_v9, 0.0  ;;  %v1360_v14 = vmul.f32 %v1358_v54, %v1326_v12  ;;  %v1398_v22 = vmul.f32 %v1396_v55, %v1326_v12 }
0x16b3   :  { %v1386_v19 = vsel %vm1367_vm5, %v1365_v10, 0.0  ;;  %v1423_v21 = vsel %vm1367_vm5, %v1403_v20, 0.0  ;;  %v1361_v23 = vmul.f32 %v1358_v54, %v1325_v17  ;;  %v1399_v7 = vmul.f32 %v1396_v55, %v1325_v17 }
0x16b4   :  { %v1371_v18 = vsel %vm1367_vm5, %v1360_v14, 0.0  ;;  %v1408_v25 = vsel %vm1367_vm5, %v1398_v22, 0.0  ;;  %v1327_v26 = vcombine.high %v1325_v17, %v1325_v17  ;;  %v3262_v39 = vcombine.high %v3245_v4, %v3245_v4 }
0x16b5   :  { %1406 = vadd.xlane.f32.xlu0 %v1405_v5  ;;  %1369 = vadd.xlane.f32.xlu1 %v1368_v6  ;;  %v1374_v60 = vsel %vm1367_vm5, %v1361_v23, 0.0  ;;  %v1411_v28 = vsel %vm1367_vm5, %v1399_v7, 0.0  ;;  %v1633_v43 = vrot.slane %v1318_v57, %v3226_v51  ;;  %v1640_v45 = vrot.slane %v1326_v12, %v3226_v51 }
0x16b6   :  { %v1362_v29 = vmul.f32 %v1358_v54, %v1327_v26  ;;  %v1400_v30 = vmul.f32 %v1396_v55, %v1327_v26  ;;  %v1366_v35 = vmul.f32 %v1358_v54, %v3262_v39  ;;  %v1404_v36 = vmul.f32 %v1396_v55, %v3262_v39 }
0x16b7   :  { %v1647_v46 = vrot.slane %v1325_v17, %v3226_v51  ;;  %v1654_v47 = vrot.slane %v1327_v26, %v3226_v51  ;;  %v1661_v44 = vrot.slane %v3233_v56, %v3226_v51  ;;  %v1438_v58 = vand.u32 127, %v1315_v33 }
0x16b8   :  { %v1377_v32 = vsel %vm1367_vm5, %v1362_v29, 0.0  ;;  %v1414_v34 = vsel %vm1367_vm5, %v1400_v30, 0.0  ;;  %v1389_v38 = vsel %vm1367_vm5, %v1366_v35, 0.0  ;;  %v1426_v42 = vsel %vm1367_vm5, %v1404_v36, 0.0 }
0x16b9   :  { %1384 = vadd.xlane.f32.xlu0 %v1383_v13  ;;  %1421 = vadd.xlane.f32.xlu1 %v1420_v16  ;;  %v1494_v63 = vadd.s32 4294967294, %v1438_v58  ;;  %v1441_v5 = vsub.s32 %v1438_v58, %v3204_v37 }
0x16bb   :  { %v1497_v2 = vsub.s32 %v1494_v63, %v3204_v37 }
0x16bd   :  { %1387 = vadd.xlane.f32.xlu0 %v1386_v19  ;;  %1424 = vadd.xlane.f32.xlu1 %v1423_v21 }
0x16c1   :  { %1372 = vadd.xlane.f32.xlu0 %v1371_v18  ;;  %1409 = vadd.xlane.f32.xlu1 %v1408_v25 }
0x16c5   :  { %1375 = vadd.xlane.f32.xlu0 %v1374_v60  ;;  %1412 = vadd.xlane.f32.xlu1 %v1411_v28 }
0x16c9   :  { %1378 = vadd.xlane.f32.xlu0 %v1377_v32  ;;  %1415 = vadd.xlane.f32.xlu1 %v1414_v34 }
0x16cd   :  { %1390 = vadd.xlane.f32.xlu0 %v1389_v38  ;;  %1427 = vadd.xlane.f32.xlu1 %v1426_v42 }
0x16de   :  { %1683 = vrot.lane.b32.xlu1 %v1633_v43, %s2774_s5 }
0x16e3   :  { %1685 = vrot.lane.b32.xlu0 %v1640_v45, %s2774_s5 }
0x16e7   :  { %1687 = vrot.lane.b32.xlu0 %v1647_v46, %s2774_s5 }
0x16eb   :  { %1689 = vrot.lane.b32.xlu0 %v1654_v47, %s2774_s5 }
0x16ef   :  { %1691 = vrot.lane.b32.xlu0 %v1661_v44, %s2774_s5 }
0x173e   :  { %v1419_v24 = vpop.xlane.xlu1 %1418  ;;  %v1382_v52 = vpop.xlane.xlu0 %1381 }
0x173f   :  { %v1514_v14 = vrot.slane %v1419_v24, %v1497_v2  ;;  %v1458_v22 = vrot.slane %v1382_v52, %v1441_v5 }
0x1742   :  { %v1407_v53 = vpop.xlane.xlu0 %1406  ;;  %v1370_v54 = vpop.xlane.xlu1 %1369 }
0x1743   :  { %v1498_v13 = vrot.slane %v1407_v53, %v1497_v2  ;;  %v1442_v16 = vrot.slane %v1370_v54, %v1441_v5 }
0x1746   :  { %v1385_v55 = vpop.xlane.xlu0 %1384  ;;  %v1422_v57 = vpop.xlane.xlu1 %1421 }
0x1747   :  { %v1462_v25 = vrot.slane %v1385_v55, %v1441_v5  ;;  %v1518_v7 = vrot.slane %v1422_v57, %v1497_v2 }
0x174a   :  { %v1388_v59 = vpop.xlane.xlu0 %1387  ;;  %v1425_v61 = vpop.xlane.xlu1 %1424 }
0x174b   :  { %v1466_v28 = vrot.slane %v1388_v59, %v1441_v5  ;;  %v1522_v29 = vrot.slane %v1425_v61, %v1497_v2 }
0x174e   :  { %v1373_v0 = vpop.xlane.xlu0 %1372  ;;  %v1410_v1 = vpop.xlane.xlu1 %1409 }
0x174f   :  { %v1446_v8 = vrot.slane %v1373_v0, %v1441_v5  ;;  %v1502_v9 = vrot.slane %v1410_v1, %v1497_v2 }
0x1751   :  { %v1472_v20 = vsel %vm1471_vm6, %v1446_v8, %v1442_v16  ;;  %v1527_v17 = vsel %vm1471_vm6, %v1502_v9, %v1498_v13 }
0x1752   :  { %v1376_v56 = vpop.xlane.xlu0 %1375  ;;  %v1413_v6 = vpop.xlane.xlu1 %1412 }
0x1753   :  { %v1450_v3 = vrot.slane %v1376_v56, %v1441_v5  ;;  %v1506_v12 = vrot.slane %v1413_v6, %v1497_v2 }
0x1755   :  { %v1474_v23 = vsel %vm1473_vm7, %v1450_v3, %v1472_v20  ;;  %v1528_v18 = vsel %vm1473_vm7, %v1506_v12, %v1527_v17  ;;  %v1668_v20 = vrot.slane %v3240_v62, %v3226_v51  ;;  %v1594_v17 = vsub.s32 3, %v3204_v37 }
0x1756   :  { %v1379_v33 = vpop.xlane.xlu0 %1378  ;;  %v1416_v10 = vpop.xlane.xlu1 %1415  ;;  %v1682_v62 = vrot.slane %v3262_v39, %v3226_v51 }
0x1757   :  { %v1454_v19 = vrot.slane %v1379_v33, %v1441_v5  ;;  %v1510_v21 = vrot.slane %v1416_v10, %v1497_v2  ;;  %v1587_v33 = vsub.s32 2, %v3204_v37 }
0x1759   :  { %v1476_v26 = vsel %vm1475_vm8, %v1454_v19, %v1474_v23  ;;  %v1529_v60 = vsel %vm1475_vm8, %v1510_v21, %v1528_v18  ;;  %v1601_v19 = vsub.s32 4, %v3204_v37  ;;  %v1622_v18 = vsub.s32 7, %v3204_v37 }
0x175a   :  { %v1478_v30 = vsel %vm1477_vm9, %v1458_v22, %v1476_v26  ;;  %v1530_v32 = vsel %vm1477_vm9, %v1514_v14, %v1529_v60  ;;  %v1391_v34 = vpop.xlane.xlu0 %1390  ;;  %v1428_v35 = vpop.xlane.xlu1 %1427  ;;  %v1608_v14 = vsub.s32 5, %v3204_v37 }
0x175b   :  { %v1470_v36 = vrot.slane %v1391_v34, %v1441_v5  ;;  %v1480_v38 = vsel %vm1479_vm10, %v1462_v25, %v1478_v30  ;;  %v1531_v42 = vsel %vm1479_vm10, %v1518_v7, %v1530_v32  ;;  %v1526_v43 = vrot.slane %v1428_v35, %v1497_v2 }
0x175c   :  { %v1482_v45 = vsel %vm1481_vm11, %v1466_v28, %v1480_v38  ;;  %v1532_v46 = vsel %vm1481_vm11, %v1522_v29, %v1531_v42 }
0x175d   :  { %v1484_v47 = vsel %vm1483_vm12, %v1470_v36, %v1482_v45  ;;  %v1533_v44 = vsel %vm1483_vm12, %v1526_v43, %v1532_v46 }
0x175e   :  { %v1536_v24 = vsel %vm1535_vm13, %v1484_v47, %v1533_v44  ;;  %v1686_v39 = vpop.permute.xlu0 %1685  ;;  %v1684_v26 = vpop.permute.xlu1 %1683 }
0x175f   :  { %v1538_v52 = vsel %vm1537_vm14, %v1536_v24, -inf }
0x1760   :  { %v1539_v53 = vrot.slane %v1538_v52, 4 }
0x1762   :  { %v1540_v54 = vmax.f32 %v1538_v52, %v1539_v53  ;;  %v1688_v7 = vpop.permute.xlu0 %1687 }
0x1764   :  { %v1541_v55 = vrot.slane %v1540_v54, 2 }
0x1766   :  { %v1542_v57 = vmax.f32 %v1540_v54, %v1541_v55  ;;  %v1690_v60 = vpop.permute.xlu0 %1689 }
0x1768   :  { %v1543_v58 = vrot.slane %v1542_v57, 1 }
0x176a   :  { %v1544_v59 = vmax.f32 %v1542_v57, %v1543_v58  ;;  %v1692_v29 = vpop.permute.xlu0 %1691 }
0x176c   :  { %v1545_v61 = vsub.f32 %v1536_v24, %v1544_v59 }
0x176e   :  { %v1546_v63 = vmul.f32 1.442695, %v1545_v61 }
0x1770   :  { %2742 = vpow2.f32 %v1546_v63 }
0x177a   :  { %v2743_v0 = vpop.eup %2742 }
0x177b   :  { %v1548_v1 = vsel %vm1537_vm14, %v2743_v0, 0.0 }
0x177c   :  { %v1549_v2 = vrot.slane %v1548_v1, 4 }
0x177e   :  { %v1550_v5 = vadd.f32 %v1549_v2, %v1548_v1 }
0x1780   :  { %v1551_v56 = vrot.slane %v1550_v5, 2 }
0x1782   :  { %v1552_v6 = vadd.f32 %v1551_v56, %v1550_v5 }
0x1784   :  { %v1553_v8 = vrot.slane %v1552_v6, 1 }
0x1786   :  { %v1554_v9 = vadd.f32 %v1553_v8, %v1552_v6 }
0x1788   :  { %2744 = vrcp.f32 %v1554_v9 }
0x1792   :  { %v2745_v3 = vpop.eup %2744 }
0x1793   :  { %v1556_v12 = vmul.f32 %v2745_v3, %v2743_v0 }
0x1795   :  { %v3301_v13 = vrot.slane %v1556_v12, %v1394_v41  ;;  %v3305_v16 = vrot.slane %v1556_v12, %v1356_v40  ;;  %v3310_v10 = vrot.slane %v1556_v12, %v1587_v33  ;;  %v3317_v41 = vrot.slane %v1556_v12, %v1594_v17  ;;  %v1561_v33 = vld [vmem:[%s3502_s14] sm:$0xff]  ;;  %v1563_v17 = vld [vmem:[%s3502_s14 + $0x10] sm:$0xff] }
0x1796   :  { %v1675_v40 = vrot.slane %v3245_v4, %v3226_v51  ;;  %v3324_v21 = vrot.slane %v1556_v12, %v1601_v19  ;;  %v3331_v22 = vrot.slane %v1556_v12, %v1608_v14  ;;  %v1615_v4 = vsub.s32 6, %v3204_v37  ;;  %v1564_v19 = vld [vmem:[%s3502_s14 + $0x18] sm:$0xff] }
0x1797   :  { %1583 = vbcast.lane.b32.xlu1 %v3301_v13, 256  ;;  %1576 = vbcast.lane.b32.xlu0 %v3305_v16, 256  ;;  %v3339_v25 = vrot.slane %v1556_v12, %v1622_v18  ;;  %v1557_v18 = vld [vmem:[%s3501_s13] sm:$0xff] }
0x1798   :  { %v3335_v23 = vrot.slane %v1556_v12, %v1615_v4 }
0x179b   :  { %1590 = vbcast.lane.b32.xlu1 %v3310_v10, 256  ;;  %1693 = vrot.lane.b32.xlu0 %v1668_v20, %s2774_s5  ;;  %v1562_v20 = vld [vmem:[%s3502_s14 + $0x8] sm:$0xff] }
0x179f   :  { %1597 = vbcast.lane.b32.xlu1 %v3317_v41, 256  ;;  %1695 = vrot.lane.b32.xlu0 %v1675_v40, %s2774_s5  ;;  %v2669_v40 = vpack.c.bf16 %v1562_v20, %v1561_v33 }
0x17a1   :  { %2670 = vmatpush3.bf16.msra.mxu1 %v2669_v40 }
0x17a2   :  { %2671 = vmatprep.subr.bf16.mxu1 %v2770_v11 }
0x17a3   :  { %1604 = vbcast.lane.b32.xlu1 %v3324_v21, 256  ;;  %1697 = vrot.lane.b32.xlu0 %v1682_v62, %s2774_s5  ;;  %v2672_v62 = vpack.c.bf16 %v1564_v19, %v1563_v17 }
0x17a5   :  { %2673 = vmatpush3.bf16.msra.mxu1 %v2672_v62 }
0x17a6   :  { %2680 = vmatprep.subr.bf16.mxu1 %v2770_v11 }
0x17a7   :  { %1611 = vbcast.lane.b32.xlu1 %v3331_v22, 256 }
0x17ab   :  { %1618 = vbcast.lane.b32.xlu1 %v3335_v23, 256 }
0x17af   :  { %1625 = vbcast.lane.b32.xlu1 %v3339_v25, 256 }
0x1809   :  { %v1584_v28 = vpop.permute.xlu1 %1583  ;;  %v1577_v32 = vpop.permute.xlu0 %1576 }
0x180a   :  { %v1707_v35 = vmul.f32 %v1684_v26, %v1577_v32  ;;  %v1708_v36 = vmul.f32 %v1686_v39, %v1584_v28  ;;  %v1558_v39 = vld [vmem:[%s3501_s13 + $0x8] sm:$0xff] }
0x180c   :  { %v1715_v43 = vsel %vm1367_vm5, %v1707_v35, 0.0  ;;  %v1716_v45 = vsel %vm1367_vm5, %v1708_v36, 0.0  ;;  %v1899_v35 = vrot.slane %v3223_v50, %v3226_v51 }
0x180d   :  { %v1591_v30 = vpop.permute.xlu1 %1590  ;;  %v1694_v42 = vpop.permute.xlu0 %1693  ;;  %v1717_v24 = vadd.f32 %v1716_v45, %v1715_v43 }
0x180e   :  { %v1709_v38 = vmul.f32 %v1688_v7, %v1591_v30  ;;  %v2675_v7 = vpack.c.bf16 %v1558_v39, %v1557_v18 }
0x1810   :  { %v1718_v47 = vsel %vm1367_vm5, %v1709_v38, 0.0  ;;  %2676 = vmatpush3.bf16.msra.mxu0 %v2675_v7  ;;  %v1907_v38 = vcombine.high %v1899_v35, %v1899_v35 }
0x1811   :  { %v1598_v34 = vpop.permute.xlu1 %1597  ;;  %v1719_v55 = vadd.f32 %v1718_v47, %v1717_v24  ;;  %v1696_v57 = vpop.permute.xlu0 %1695  ;;  %2677 = vmatprep.subr.bf16.mxu0 %v2770_v11 }
0x1812   :  { %v1710_v46 = vmul.f32 %v1690_v60, %v1598_v34  ;;  %v1559_v60 = vld [vmem:[%s3501_s13 + $0x10] sm:$0xff]  ;;  %v1892_v34 = vcombine.high %v3223_v50, %v3223_v50 }
0x1814   :  { %v1720_v53 = vsel %vm1367_vm5, %v1710_v46, 0.0  ;;  %v1906_v36 = vrot.slane %v1892_v34, %v3226_v51 }
0x1815   :  { %v1605_v37 = vpop.permute.xlu1 %1604  ;;  %v1721_v59 = vadd.f32 %v1720_v53, %v1719_v55  ;;  %v1698_v5 = vpop.permute.xlu0 %1697 }
0x1816   :  { %v1711_v44 = vmul.f32 %v1692_v29, %v1605_v37 }
0x1818   :  { %v1722_v58 = vsel %vm1367_vm5, %v1711_v44, 0.0  ;;  %v1908_v44 = vcombine.high %v1906_v36, %v1906_v36 }
0x1819   :  { %v1612_v52 = vpop.permute.xlu1 %1611  ;;  %v1723_v1 = vadd.f32 %v1722_v58, %v1721_v59  ;;  %v1909_v58 = vcombine.high %v3221_v49, %v3221_v49 }
0x181a   :  { %v1712_v54 = vmul.f32 %v1694_v42, %v1612_v52 }
0x181c   :  { %v1724_v63 = vsel %vm1367_vm5, %v1712_v54, 0.0  ;;  %v1916_v54 = vrot.slane %v3221_v49, %v3226_v51 }
0x181d   :  { %v1619_v61 = vpop.permute.xlu1 %1618  ;;  %v1725_v56 = vadd.f32 %v1724_v63, %v1723_v1  ;;  %v1923_v1 = vrot.slane %v1909_v58, %v3226_v51 }
0x181e   :  { %v1713_v0 = vmul.f32 %v1696_v57, %v1619_v61  ;;  %v1924_v59 = vcombine.high %v1916_v54, %v1916_v54 }
0x181f   :  { %v1925_v49 = vcombine.high %v1923_v1, %v1923_v1 }
0x1820   :  { %v1726_v2 = vsel %vm1367_vm5, %v1713_v0, 0.0 }
0x1821   :  { %v1626_v6 = vpop.permute.xlu1 %1625  ;;  %v1727_v9 = vadd.f32 %v1726_v2, %v1725_v56 }
0x1822   :  { %v1714_v8 = vmul.f32 %v1698_v5, %v1626_v6 }
0x1824   :  { %v1728_v3 = vsel %vm1367_vm5, %v1714_v8, 0.0 }
0x1825   :  { %v1729_v12 = vadd.f32 %v1728_v3, %v1727_v9 }
0x1827   :  { %1731 = vrot.lane.b32.xlu1 %v1729_v12, %s2776_s9 }
0x1899   :  { %v1732_v14 = vpop.permute.xlu1 %1731 }
0x189a   :  { %v1734_v4 = vmul.f32 %v1732_v14, %v3215_v27 }
0x189c   :  { %1742 = vrot.lane.b32.xlu0 %v1734_v4, %s2774_s5 }
0x18a0   :  { %1963 = vbcast.lane.b32.xlu0 %v3305_v16, 258  ;;  %v1560_v16 = vld [vmem:[%s3501_s13 + $0x18] sm:$0xff] }
0x18a1   :  { %v2678_v28 = vpack.c.bf16 %v1560_v16, %v1559_v60 }
0x18a3   :  { %2679 = vmatpush3.bf16.msra.mxu0 %v2678_v28 }
0x18a4   :  { %1971 = vbcast.lane.b32.xlu0 %v3310_v10, 258  ;;  %v2300_v10 = vld [vmem:[%s3503_s15] ss:$0 sm:$0xff] }
0x18a8   :  { %1975 = vbcast.lane.b32.xlu0 %v3317_v41, 258 }
0x18ac   :  { %1979 = vbcast.lane.b32.xlu0 %v3324_v21, 258 }
0x190e   :  { %v1743_v26 = vpop.permute.xlu0 %1742 }
0x190f   :  { %2542 = vmatmul.mubr.msk.f32.vlgmr.msra.gmra.mrb[14].mxu1 %vm188_vm0, %v1743_v26 }
0x1910   :  { %2563 = vmatprep.mubr.msk.f32.mxu1 %vm2771_vm1, %v2772_v15 }
0x1912   :  { %v1964_v12 = vpop.permute.xlu0 %1963 }
0x1916   :  { %v1972_v33 = vpop.permute.xlu0 %1971 }
0x191a   :  { %v1976_v20 = vpop.permute.xlu0 %1975 }
0x191e   :  { %v1980_v40 = vpop.permute.xlu0 %1979 }
0x19e2   :  { %v1812_v41 = vpop.f32.mrb[14].mxu1 }
0x19e3   :  { %v3390_v21 = vadd.f32 %v2300_v10, %v1812_v41  ;;  %v2543_v29 = vpop.f32.mrb[15].mxu1 }
0x19e5   :  { %2553 = vmatmul.mubr.msk.f32.vlgmr.msra.gmra.mrb[10].mxu0 %vm188_vm0, %v3390_v21 }
0x1ab8   :  { %v1886_v15 = vpop.f32.mrb[10].mxu0 }
0x1ab9   :  { %v1941_v30 = vrot.slane %v1886_v15, %v3226_v51  ;;  %v2554_v32 = vpop.f32.mrb[11].mxu0 }
0x1abb   :  { %1942 = vrot.lane.b32.xlu1 %v1941_v30, %s2773_s27 }
0x1abf   :  { %1967 = vbcast.lane.b32.xlu1 %v3301_v13, 258 }
0x1b2d   :  { %v1943_v42 = vpop.permute.xlu1 %1942 }
0x1b2e   :  { %v1946_v37 = vadd.f32 %v1943_v42, %v1907_v38  ;;  %v1945_v43 = vadd.f32 %v1943_v42, %v1899_v35  ;;  %v1947_v45 = vadd.f32 %v1943_v42, %v1906_v36  ;;  %v1948_v53 = vadd.f32 %v1943_v42, %v1908_v44  ;;  %v1565_v38 = vld [vmem:[%s3502_s14 + $0x20] sm:$0xff] }
0x1b2f   :  { %v1949_v57 = vadd.f32 %v1943_v42, %v1916_v54  ;;  %v1950_v0 = vadd.f32 %v1943_v42, %v1924_v59  ;;  %v1951_v56 = vadd.f32 %v1943_v42, %v1923_v1  ;;  %v1952_v8 = vadd.f32 %v1943_v42, %v1925_v49  ;;  %v1566_v42 = vld [vmem:[%s3502_s14 + $0x28] sm:$0xff] }
0x1b30   :  { %v1954_v46 = vmax.f32 %v1946_v37, 0.0  ;;  %v1953_v47 = vmax.f32 %v1945_v43, 0.0  ;;  %v1955_v52 = vmax.f32 %v1947_v45, 0.0  ;;  %v1956_v55 = vmax.f32 %v1948_v53, 0.0  ;;  %v1567_v37 = vld [vmem:[%s3502_s14 + $0x30] sm:$0xff] }
0x1b31   :  { %v1957_v63 = vmax.f32 %v1949_v57, 0.0  ;;  %v1958_v5 = vmax.f32 %v1950_v0, 0.0  ;;  %v1959_v6 = vmax.f32 %v1951_v56, 0.0  ;;  %v1960_v3 = vmax.f32 %v1952_v8, 0.0 }
0x1b32   :  { %v2014_v24 = vrot.slane %v1954_v46, %v3226_v51  ;;  %v2007_v13 = vrot.slane %v1953_v47, %v3226_v51  ;;  %v2021_v50 = vrot.slane %v1955_v52, %v3226_v51  ;;  %v2028_v61 = vrot.slane %v1956_v55, %v3226_v51  ;;  %v1568_v47 = vld [vmem:[%s3502_s14 + $0x38] sm:$0xff] }
0x1b33   :  { %v2035_v2 = vrot.slane %v1957_v63, %v3226_v51  ;;  %v2049_v9 = vrot.slane %v1959_v6, %v3226_v51  ;;  %v2681_v46 = vpack.c.bf16 %v1566_v42, %v1565_v38  ;;  %v2684_v52 = vpack.c.bf16 %v1568_v47, %v1567_v37 }
0x1b34   :  { %2059 = vrot.lane.b32.xlu1 %v2014_v24, %s2773_s27  ;;  %2057 = vrot.lane.b32.xlu0 %v2007_v13, %s2773_s27  ;;  %v2191_v8 = vcombine.high %v3099_v48, %v3099_v48 }
0x1b35   :  { %2682 = vmatpush3.bf16.msra.mxu1 %v2681_v46 }
0x1b36   :  { %2683 = vmatprep.subr.bf16.mxu1 %v2770_v11  ;;  %v2303_v11 = vld [vmem:[%s3503_s15 + $0x1] ss:$0 sm:$0xff]  ;;  %s2777_s15 = smov [#allocation2]  }
0x1b38   :  { %2061 = vrot.lane.b32.xlu1 %v2021_v50, %s2773_s27  ;;  %1983 = vbcast.lane.b32.xlu0 %v3331_v22, 258  ;;  %v2042_v22 = vrot.slane %v1958_v5, %v3226_v51 }
0x1b39   :  { %2685 = vmatpush3.bf16.msra.mxu1 %v2684_v52 }
0x1b3c   :  { %2063 = vrot.lane.b32.xlu1 %v2028_v61, %s2773_s27  ;;  %1987 = vbcast.lane.b32.xlu0 %v3335_v23, 258  ;;  %v2056_v23 = vrot.slane %v1960_v3, %v3226_v51  ;;  %v2205_v3 = vrot.slane %v2191_v8, %v3226_v51 }
0x1b40   :  { %2065 = vrot.lane.b32.xlu1 %v2035_v2, %s2773_s27  ;;  %1991 = vbcast.lane.b32.xlu0 %v3339_v25, 258  ;;  %v1968_v25 = vpop.permute.xlu1 %1967 }
0x1b44   :  { %2067 = vrot.lane.b32.xlu1 %v2042_v22, %s2773_s27 }
0x1b48   :  { %2069 = vrot.lane.b32.xlu1 %v2049_v9, %s2773_s27 }
0x1b4c   :  { %2071 = vrot.lane.b32.xlu1 %v2056_v23, %s2773_s27 }
0x1ba6   :  { %v2060_v17 = vpop.permute.xlu1 %2059  ;;  %v2058_v62 = vpop.permute.xlu0 %2057 }
0x1ba7   :  { %v2081_v4 = vmul.f32 %v2058_v62, %v1964_v12  ;;  %v2082_v18 = vmul.f32 %v2060_v17, %v1968_v25  ;;  %v2208_v62 = vcombine.high %v3193_v31, %v3193_v31 }
0x1ba9   :  { %v2089_v60 = vsel %vm1367_vm5, %v2081_v4, 0.0  ;;  %v2090_v16 = vsel %vm1367_vm5, %v2082_v18, 0.0  ;;  %v2222_v18 = vrot.slane %v2208_v62, %v3226_v51 }
0x1baa   :  { %v2062_v19 = vpop.permute.xlu1 %2061  ;;  %v1984_v7 = vpop.permute.xlu0 %1983  ;;  %v2091_v29 = vadd.f32 %v2090_v16, %v2089_v60 }
0x1bab   :  { %v2083_v39 = vmul.f32 %v2062_v19, %v1972_v33  ;;  %v2207_v33 = vcombine.high %v2205_v3, %v2205_v3 }
0x1bad   :  { %v2092_v10 = vsel %vm1367_vm5, %v2083_v39, 0.0  ;;  %v2239_v17 = vsel %vm2233_vm15, %v2207_v33, 0.0 }
0x1bae   :  { %v2064_v14 = vpop.permute.xlu1 %2063  ;;  %v2093_v34 = vadd.f32 %v2092_v10, %v2091_v29  ;;  %v1988_v35 = vpop.permute.xlu0 %1987 }
0x1baf   :  { %v2084_v28 = vmul.f32 %v2064_v14, %v1976_v20  ;;  %v2215_v20 = vrot.slane %v3193_v31, %v3226_v51 }
0x1bb1   :  { %v2094_v30 = vsel %vm1367_vm5, %v2084_v28, 0.0 }
0x1bb2   :  { %v2066_v26 = vpop.permute.xlu1 %2065  ;;  %v2095_v43 = vadd.f32 %v2094_v30, %v2093_v34  ;;  %v1992_v54 = vpop.permute.xlu0 %1991 }
0x1bb3   :  { %v2085_v41 = vmul.f32 %v2066_v26, %v1980_v40  ;;  %v2223_v40 = vcombine.high %v2215_v20, %v2215_v20  ;;  %v2245_v26 = vsel %vm2233_vm15, %v2222_v18, 0.0 }
0x1bb5   :  { %v2096_v36 = vsel %vm1367_vm5, %v2085_v41, 0.0  ;;  %v2243_v4 = vsel %vm2233_vm15, %v2223_v40, 0.0 }
0x1bb6   :  { %v2068_v15 = vpop.permute.xlu1 %2067  ;;  %v2097_v13 = vadd.f32 %v2096_v36, %v2095_v43 }
0x1bb7   :  { %v2086_v32 = vmul.f32 %v2068_v15, %v1984_v7  ;;  %v2224_v7 = vcombine.high %v2222_v18, %v2222_v18 }
0x1bb9   :  { %v2098_v44 = vsel %vm1367_vm5, %v2086_v32, 0.0  ;;  %v2247_v16 = vsel %vm2233_vm15, %v2224_v7, 0.0 }
0x1bba   :  { %v2070_v45 = vpop.permute.xlu1 %2069  ;;  %v2099_v50 = vadd.f32 %v2098_v44, %v2097_v13 }
0x1bbb   :  { %v2087_v24 = vmul.f32 %v2070_v45, %v1988_v35 }
0x1bbd   :  { %v2100_v53 = vsel %vm1367_vm5, %v2087_v24, 0.0 }
0x1bbe   :  { %v2072_v55 = vpop.permute.xlu1 %2071  ;;  %v2101_v58 = vadd.f32 %v2100_v53, %v2099_v50 }
0x1bbf   :  { %v2088_v57 = vmul.f32 %v2072_v55, %v1992_v54 }
0x1bc1   :  { %v2102_v59 = vsel %vm1367_vm5, %v2088_v57, 0.0 }
0x1bc2   :  { %v2103_v61 = vadd.f32 %v2102_v59, %v2101_v58 }
0x1bc4   :  { %2105 = vrot.lane.b32.xlu0 %v2103_v61, %s2773_s27 }
0x1c36   :  { %v2106_v63 = vpop.permute.xlu0 %2105 }
0x1c37   :  { %v2108_v0 = vmul.f32 %v2106_v63, %v3215_v27  ;;  %v2198_v27 = vrot.slane %v3099_v48, %v3226_v51  ;;  %v2241_v48 = vsel %vm2233_vm15, %v2215_v20, 0.0 }
0x1c39   :  { %2116 = vrot.lane.b32.xlu1 %v2108_v0, %s2773_s27  ;;  %v2206_v6 = vcombine.high %v2198_v27, %v2198_v27  ;;  %v2234_v23 = vsel %vm2233_vm15, %v2198_v27, 0.0  ;;  %s2266_s27 = sshll.u32 %s2777_s15, 4  ;;  %s2267_s27 = int_to_ptr.vmem [resolvable:$true] %s2266_s27 }
0x1c3a   :  { %p2751_p1 = scmp.lt.s32.totalorder %s2267_s27, %s2267_s27 }
0x1c3b   :  { %v2235_v9 = vsel %vm2233_vm15, %v2206_v6, 0.0 }
0x1c3c   :  { %v2236_v12 = vadd.f32 %v2235_v9, %v2234_v23 }
0x1cab   :  { %v2117_v1 = vpop.permute.xlu1 %2116 }
0x1cac   :  { %2564 = vmatmul.mubr.msk.f32.vlgmr.msra.gmra.mrb[16].mxu1 %vm188_vm0, %v2117_v1 }
0x1d7f   :  { %v2186_v2 = vpop.f32.mrb[16].mxu1 }
0x1d80   :  { %v2187_v5 = vadd.f32 %v2303_v11, %v2186_v2  ;;  %v2565_v56 = vpop.f32.mrb[17].mxu1 }
0x1d82   :  { %v2190_v49 = vadd.f32 %v2187_v5, %v3390_v21  ;;  %v2237_v21 = vsel %vm2233_vm15, %v2205_v3, 0.0 }
0x1d83   :  { %v2238_v25 = vadd.f32 %v2237_v21, %v2236_v12 }
0x1d84   :  { %v2249_v22 = vmul.f32 8.0, %v2190_v49 }
0x1d85   :  { %v2240_v19 = vadd.f32 %v2239_v17, %v2238_v25 }
0x1d86   :  { %2251 = vrot.lane.b32.xlu0 %v2249_v22, %s2776_s9  ;;  %s2746_s9 = scalar_lea.vmem %s2267_s27, 32 }
0x1d87   :  { %v2242_v14 = vadd.f32 %v2241_v48, %v2240_v19  ;;  %p2747_p0 = scmp.ne.s32.totalorder %s2267_s27, %s2746_s9  ;;  %p2752_p2 = scmp.lt.s32.totalorder %s2746_s9, %s2746_s9 }
0x1d89   :  { %v2244_v39 = vadd.f32 %v2243_v4, %v2242_v14  ;;  %p2753_p3 = por %p2752_p2, %p2751_p1 }
0x1d8b   :  { %v2246_v60 = vadd.f32 %v2245_v26, %v2244_v39  ;;  %p2754_p4 = pnand %p2753_p3, %p2747_p0 }
0x1d8d   :  { %v2248_v28 = vadd.f32 %v2247_v16, %v2246_v60 }
0x1df8   :  { %v2252_v10 = vpop.permute.xlu0 %2251 }
0x1df9   :  { %v2254_v41 = vadd.f32 %v2252_v10, %v2248_v28 }
0x1dfb   :  { %2256 = vrot.lane.b32.xlu1 %v2254_v41, %s2774_s5 }
0x1e6d   :  { %v2257_v31 = vpop.permute.xlu1 %2256 }
0x1e6e   :  { %2259 = vst.msk [vmem:[#allocation2] sm:$0x3] %vm1367_vm5, %v2257_v31 }
0x1e6f   :  { %2757 = shalt.err (!%p2754_p4)
}
0x1e70   :  { %s2758_s25 = scalar_lea.hbm %s3504_s16, 32 }
0x1e71   :  { %p2759_p5 = scmp.ne.s32.totalorder %s3504_s16, %s2758_s25  ;;  %p2762_p6 = scmp.lt.u32.totalorder %s2758_s25, %s3504_s16 }
0x1e73   :  { %p2764_p7 = pnand %p2762_p6, %p2759_p5 }
0x1e75   :  { %2767 = shalt.err (!%p2764_p7)
}
0x1e76   :  { %2269 = dma.vmem_to_hbm [thread:$0]  %s2267_s27, 32, %s3504_s16, [#allocation3]  }
0x1e77   :  { %2768 = dma.done.wait [#allocation3], 32  }
0x1e78   :  { %2769 = vsyncadd [#allocation3], 4294967264 }
0x1e79   :  { %2273 = vsyncpa [#allocation3], 1 }

</bundles_post_ra>
